<compile_context>
chip_gen: v7x
topology: tpu7x:2x2x1
jax: 0.10.0
libtpu: 0.0.40
codegen_flags: <defaults>
</compile_context>

<pallas_src>
import jax
import jax.numpy as jnp
from jax import lax
from jax.experimental import pallas as pl
from jax.experimental.pallas import tpu as pltpu

EMBRACE = 128            # embracement_size (lane-aligned small stand-in for 256)
HEADS = 8                # fixed in MultiHeadAttention.__init__
DIM_HEAD = 64            # fixed in MultiHeadAttention.__init__
INNER = HEADS * DIM_HEAD # 512
SCALE = DIM_HEAD ** -0.5


# ---------------------------------------------------------------------------
# The single fused kernel: docking + multi-head attention + embracement.
# ---------------------------------------------------------------------------
def make_fused_kernel(batch, num_modalities, embrace):
    B, M, E = batch, num_modalities, embrace
    BM = B * M

    def fused_kernel(x_ref, wdock_ref, bdock_ref, wqkv_ref, wout_ref, bout_ref,
                     idx_ref, o_ref):
        # ---- docking: block-diagonal linear + ReLU (all modalities at once) ----
        x = x_ref[...]                                             # [B, sum(Din)] f32
        wdock = wdock_ref[...]                                     # [sum(Din), M*E] f32
        dock = jnp.dot(x, wdock, preferred_element_type=jnp.float32) + bdock_ref[...]
        dock = jnp.maximum(dock, 0.0)                              # [B, M*E]

        # tokens: row t = m*B + b  (sublane-concat of lane-aligned E slices)
        d = jnp.concatenate([dock[:, m * E:(m + 1) * E] for m in range(M)],
                            axis=0)                                # [B*M, E]

        # ---- attention: one lane-dense QKV projection ----
        wqkv = wqkv_ref[...].astype(jnp.float32)                   # [E, 3*INNER]
        qkv = jnp.dot(d, wqkv, preferred_element_type=jnp.float32) # [BM, 3*INNER]
        q = qkv[:, 0 * INNER:1 * INNER]                            # [BM, INNER] (h,d)
        k = qkv[:, 1 * INNER:2 * INNER]
        v = qkv[:, 2 * INNER:3 * INNER]

        # block-diagonal (same-batch) mask over the flattened tokens
        row_b = lax.broadcasted_iota(jnp.int32, (BM, BM), 0) % B
        col_b = lax.broadcasted_iota(jnp.int32, (BM, BM), 1) % B
        same_batch = row_b == col_b

        head_outs = []
        for h in range(HEADS):                                     # static unrolled
            qh = q[:, h * DIM_HEAD:(h + 1) * DIM_HEAD]             # [BM, D]
            kh = k[:, h * DIM_HEAD:(h + 1) * DIM_HEAD]
            vh = v[:, h * DIM_HEAD:(h + 1) * DIM_HEAD]
            # q @ k^T without an explicit transpose (contract on D)
            dots = lax.dot_general(qh, kh, (((1,), (1,)), ((), ())),
                                   preferred_element_type=jnp.float32) * SCALE
            dots = jnp.where(same_batch, dots, -1e30)              # per-batch softmax
            dots = dots - jnp.max(dots, axis=-1, keepdims=True)
            p = jnp.exp(dots)
            attn = p * pl.reciprocal(jnp.sum(p, axis=-1, keepdims=True), approx=True)
            head_outs.append(jnp.dot(attn, vh, preferred_element_type=jnp.float32))
        o_cat = jnp.concatenate(head_outs, axis=-1)                # [BM, INNER]

        wout = wout_ref[...].astype(jnp.float32)                   # [INNER, E]
        att = jnp.dot(o_cat, wout, preferred_element_type=jnp.float32) + bout_ref[...]
        # att rows: token t = m*B + b

        # ---- embracement: out[b, e] = att(token m=idx[b,e] of batch b)[e] ----
        idx = idx_ref[...]                                         # [B, E] int32
        acc = jnp.zeros((B, E), jnp.float32)
        for m in range(M):                                         # static unrolled
            acc = acc + jnp.where(idx == m, att[m * B:(m + 1) * B, :], 0.0)
        o_ref[...] = acc

    return fused_kernel


def fused_forward(x_cat, w_dock, b_dock, wqkv, wout, bout, idx):
    B = x_cat.shape[0]
    E = EMBRACE
    M = w_dock.shape[1] // E

    def full(shape):
        return pl.BlockSpec(shape, lambda i, s=shape: (0,) * len(s))

    return pl.pallas_call(
        make_fused_kernel(B, M, E),
        out_shape=jax.ShapeDtypeStruct((B, E), jnp.float32),
        grid=(1,),
        in_specs=[full(x_cat.shape), full(w_dock.shape), full(b_dock.shape),
                  full(wqkv.shape), full(wout.shape), full(bout.shape),
                  full(idx.shape)],
        out_specs=full((B, E)),
        compiler_params=pltpu.CompilerParams(dimension_semantics=("arbitrary",)),
    )(x_cat, w_dock, b_dock, wqkv, wout, bout, idx)


# ---------------------------------------------------------------------------
# Full forward (glue): concat modality inputs, normalize selection probs,
# sample modality indices, then the single fused kernel.
# ---------------------------------------------------------------------------
def embrace_net_forward(inputs, params, sample_key,
                        availabilities=None, selection_probabilities=None):
    keys_sorted = sorted(inputs)
    x_cat = jnp.concatenate([inputs[k] for k in keys_sorted], axis=1)  # [B, sum(Din)]
    B = x_cat.shape[0]
    M = len(keys_sorted)

    if availabilities is None:
        availabilities = jnp.ones((B, M), jnp.float32)
    else:
        availabilities = availabilities.astype(jnp.float32)
    if selection_probabilities is None:
        selection_probabilities = jnp.ones((B, M), jnp.float32)
    sel = selection_probabilities * availabilities
    prob_sum = jnp.sum(sel, axis=-1, keepdims=True)
    sel = sel / jnp.where(prob_sum > 0, prob_sum, 1.0)   # guard all-unavailable rows

    # TODO(synk): torch.multinomial's exact RNG stream has no JAX equivalent;
    # jax.random.categorical reproduces the same sampling distribution.
    modality_indices = jax.random.categorical(
        sample_key, jnp.log(sel)[:, None, :], shape=(B, EMBRACE)).astype(jnp.int32)

    out = fused_forward(x_cat, params["w_dock"], params["b_dock"],
                        params["wqkv"], params["wout"], params["bout"],
                        modality_indices)
    return out, modality_indices


# ---------------------------------------------------------------------------
# Deterministic parameter construction (synthetic, torch-Linear-like uniform).
# ---------------------------------------------------------------------------
def init_params(key, modalities_size):
    names = sorted(modalities_size)
    M = len(names)
    d_total = sum(modalities_size[n] for n in names)

    params = {"dock_w_t": {}, "dock_b_t": {}}
    # block-diagonal docking weight: one matmul docks every modality
    w_dock = jnp.zeros((d_total, M * EMBRACE), jnp.float32)
    b_dock = jnp.zeros((1, M * EMBRACE), jnp.float32)
    off = 0
    for m, name in enumerate(names):
        din = modalities_size[name]
        key, k1, k2 = jax.random.split(key, 3)
        bound = 1.0 / (din ** 0.5)
        w = jax.random.uniform(k1, (EMBRACE, din), jnp.float32, -bound, bound)  # torch [out, in]
        b = jax.random.uniform(k2, (EMBRACE,), jnp.float32, -bound, bound)
        params["dock_w_t"][name] = w
        params["dock_b_t"][name] = b[None, :]
        w_dock = w_dock.at[off:off + din, m * EMBRACE:(m + 1) * EMBRACE].set(w.T)
        b_dock = b_dock.at[0, m * EMBRACE:(m + 1) * EMBRACE].set(b)
        off += din
    params["w_dock"] = w_dock            # small -> kept f32 (exact zeros off-diagonal)
    params["b_dock"] = b_dock

    key, k1, k2, k3 = jax.random.split(key, 4)
    bq = 1.0 / (EMBRACE ** 0.5)
    bo = 1.0 / (INNER ** 0.5)
    # big attention weights stored in bf16 (workload is weight-DMA bound); rounded
    # once so the pure-JAX reference sees exactly the same values.
    wqkv_t = jax.random.uniform(k1, (3 * INNER, EMBRACE), jnp.float32, -bq, bq
                                ).astype(jnp.bfloat16)             # to_qkv.weight
    wout_t = jax.random.uniform(k2, (EMBRACE, INNER), jnp.float32, -bo, bo
                                ).astype(jnp.bfloat16)             # to_out.weight
    bout_t = jax.random.uniform(k3, (EMBRACE,), jnp.float32, -bo, bo)  # to_out.bias

    # kernel layouts (lane-dense):
    #   to_qkv: x @ W.T with columns ordered (h, qkv, d) -> [E, 3*INNER], (qkv, h, d)
    params["wqkv"] = (wqkv_t.T.reshape(EMBRACE, HEADS, 3, DIM_HEAD)
                      .transpose(0, 2, 1, 3).reshape(EMBRACE, 3 * INNER))
    #   to_out: concat(h d) @ W.T -> [INNER, E], rows ordered (h, d)
    params["wout"] = wout_t.T
    params["bout"] = bout_t[None, :]

    # torch-layout f32 copies for the pure-JAX reference
    params["_wqkv_t"] = wqkv_t.astype(jnp.float32)
    params["_wout_t"] = wout_t.astype(jnp.float32)
    params["_bout_t"] = bout_t[None, :]
    return params


# ---------------------------------------------------------------------------
# Pure-JAX reference (for correctness check only).
# ---------------------------------------------------------------------------
def reference_forward(inputs, params, modality_indices):
    keys_sorted = sorted(inputs)
    docks = [jax.nn.relu(inputs[k] @ params["dock_w_t"][k].T + params["dock_b_t"][k])
             for k in keys_sorted]
    d = jnp.stack(docks, axis=1)                               # [B, M, E]
    B, M, E = d.shape
    qkv = d @ params["_wqkv_t"].T                              # [B, M, 3*inner]
    qkv = qkv.reshape(B, M, HEADS, 3, DIM_HEAD).transpose(0, 2, 1, 3, 4)
    q, k, v = qkv[..., 0, :], qkv[..., 1, :], qkv[..., 2, :]   # [B, H, M, D]
    dots = jnp.einsum("bhid,bhjd->bhij", q, k) * SCALE
    attn = jax.nn.softmax(dots, axis=-1)
    out = jnp.einsum("bhij,bhjd->bhid", attn, v)               # [B, H, M, D]
    out = out.transpose(0, 2, 1, 3).reshape(B, M, INNER)
    d_att = out @ params["_wout_t"].T + params["_bout_t"]      # [B, M, E]
    toggles = jax.nn.one_hot(modality_indices, M, dtype=jnp.float32)   # [B, E, M]
    emb = jnp.sum(d_att.transpose(0, 2, 1) * toggles, axis=-1)          # [B, E]
    return emb


if __name__ == "__main__":
    root = jax.random.PRNGKey(0)
    k_param, k_audio, k_image, k_text, k_sample = jax.random.split(root, 5)

    modalities_size = {"audio": 24, "image": 40, "text": 16}
    B = 2
    params = init_params(k_param, modalities_size)

    inputs = {
        "audio": jax.random.normal(k_audio, (B, 24), jnp.float32),
        "image": jax.random.normal(k_image, (B, 40), jnp.float32),
        "text": jax.random.normal(k_text, (B, 16), jnp.float32),
    }

    fwd = jax.jit(lambda xs, key: embrace_net_forward(xs, params, key))
    out, idx = fwd(inputs, k_sample)
    out = jax.block_until_ready(out)

    ref = reference_forward(inputs, params, idx)
    assert out.shape == (B, EMBRACE)
    assert jnp.allclose(out, ref, atol=5e-3, rtol=5e-3), "mismatch vs reference"

    print("KERNEL_OK")
</pallas_src>

<mosaic_0001>
module attributes {stable_mosaic.version = 11 : i64} {
  func.func @fused_kernel(%arg0: i32, %arg1: memref<2x80xf32, #tpu.memory_space<vmem>>, %arg2: memref<80x384xf32, #tpu.memory_space<vmem>>, %arg3: memref<1x384xf32, #tpu.memory_space<vmem>>, %arg4: memref<128x1536xbf16, #tpu.memory_space<vmem>>, %arg5: memref<512x128xbf16, #tpu.memory_space<vmem>>, %arg6: memref<1x128xf32, #tpu.memory_space<vmem>>, %arg7: memref<2x128xi32, #tpu.memory_space<vmem>>, %arg8: memref<2x128xf32, #tpu.memory_space<vmem>>) attributes {dimension_semantics = [#tpu.dimension_semantics<arbitrary>], iteration_bounds = array<i64: 1>, scalar_prefetch = 0 : i64, scratch_operands = 0 : i64, tpu.core_type = #tpu.core_type<tc>, window_params = [{pipeline_mode = #tpu.pipeline_mode<synchronous>, transform_indices = @transform_0, window_bounds = array<i64: 2, 80>}, {pipeline_mode = #tpu.pipeline_mode<synchronous>, transform_indices = @transform_1, window_bounds = array<i64: 80, 384>}, {pipeline_mode = #tpu.pipeline_mode<synchronous>, transform_indices = @transform_2, window_bounds = array<i64: 1, 384>}, {pipeline_mode = #tpu.pipeline_mode<synchronous>, transform_indices = @transform_3, window_bounds = array<i64: 128, 1536>}, {pipeline_mode = #tpu.pipeline_mode<synchronous>, transform_indices = @transform_4, window_bounds = array<i64: 512, 128>}, {pipeline_mode = #tpu.pipeline_mode<synchronous>, transform_indices = @transform_5, window_bounds = array<i64: 1, 128>}, {pipeline_mode = #tpu.pipeline_mode<synchronous>, transform_indices = @transform_6, window_bounds = array<i64: 2, 128>}, {pipeline_mode = #tpu.pipeline_mode<synchronous>, transform_indices = @transform_7, window_bounds = array<i64: 2, 128>}]} {
    %c0 = arith.constant 0 : index
    %c0_0 = arith.constant 0 : index
    %0 = vector.load %arg1[%c0, %c0_0] : memref<2x80xf32, #tpu.memory_space<vmem>>, vector<2x80xf32>
    %c0_1 = arith.constant 0 : index
    %c0_2 = arith.constant 0 : index
    %1 = vector.load %arg2[%c0_1, %c0_2] : memref<80x384xf32, #tpu.memory_space<vmem>>, vector<80x384xf32>
    %cst = arith.constant dense<0.000000e+00> : vector<2x384xf32>
    %2 = tpu.matmul %0, %1, %cst {dimension_numbers = #tpu.dot_dimension_numbers<[1], [0], [0], [1], [0, 0, 1, 1], [], []>} : vector<2x80xf32>, vector<80x384xf32>, vector<2x384xf32> -> vector<2x384xf32>
    %c0_3 = arith.constant 0 : index
    %c0_4 = arith.constant 0 : index
    %3 = vector.load %arg3[%c0_3, %c0_4] : memref<1x384xf32, #tpu.memory_space<vmem>>, vector<1x384xf32>
    %4 = vector.broadcast %3 : vector<1x384xf32> to vector<2x384xf32>
    %5 = arith.addf %2, %4 : vector<2x384xf32>
    %cst_5 = arith.constant 0.000000e+00 : f32
    %6 = vector.broadcast %cst_5 : f32 to vector<2x384xf32>
    %7 = arith.maximumf %5, %6 : vector<2x384xf32>
    %8 = vector.extract_strided_slice %7 {offsets = [0, 0], sizes = [2, 128], strides = [1, 1]} : vector<2x384xf32> to vector<2x128xf32>
    %9 = vector.extract_strided_slice %7 {offsets = [0, 128], sizes = [2, 128], strides = [1, 1]} : vector<2x384xf32> to vector<2x128xf32>
    %10 = vector.extract_strided_slice %7 {offsets = [0, 256], sizes = [2, 128], strides = [1, 1]} : vector<2x384xf32> to vector<2x128xf32>
    %11 = tpu.concatenate %8, %9, %10 in 0 : vector<2x128xf32>, vector<2x128xf32>, vector<2x128xf32> -> vector<6x128xf32>
    %c0_6 = arith.constant 0 : index
    %c0_7 = arith.constant 0 : index
    %12 = vector.load %arg4[%c0_6, %c0_7] : memref<128x1536xbf16, #tpu.memory_space<vmem>>, vector<128x1536xbf16>
    %13 = arith.extf %12 : vector<128x1536xbf16> to vector<128x1536xf32>
    %cst_8 = arith.constant dense<0.000000e+00> : vector<6x1536xf32>
    %14 = tpu.matmul %11, %13, %cst_8 {dimension_numbers = #tpu.dot_dimension_numbers<[1], [0], [0], [1], [0, 0, 1, 1], [], []>} : vector<6x128xf32>, vector<128x1536xf32>, vector<6x1536xf32> -> vector<6x1536xf32>
    %15 = vector.extract_strided_slice %14 {offsets = [0, 0], sizes = [6, 512], strides = [1, 1]} : vector<6x1536xf32> to vector<6x512xf32>
    %16 = vector.extract_strided_slice %14 {offsets = [0, 512], sizes = [6, 512], strides = [1, 1]} : vector<6x1536xf32> to vector<6x512xf32>
    %17 = vector.extract_strided_slice %14 {offsets = [0, 1024], sizes = [6, 512], strides = [1, 1]} : vector<6x1536xf32> to vector<6x512xf32>
    %18 = tpu.iota {dimensions = array<i32: 0>} : vector<6x6xi32>
    %c2_i32 = arith.constant 2 : i32
    %c0_i32 = arith.constant 0 : i32
    %19 = arith.cmpi eq, %c2_i32, %c0_i32 : i32
    %c1_i32 = arith.constant 1 : i32
    %20 = arith.select %19, %c1_i32, %c2_i32 : i32
    %21 = vector.broadcast %20 : i32 to vector<6x6xi32>
    %22 = arith.remsi %18, %21 : vector<6x6xi32>
    %c0_i32_9 = arith.constant 0 : i32
    %23 = vector.broadcast %c0_i32_9 : i32 to vector<6x6xi32>
    %24 = arith.cmpi ne, %22, %23 : vector<6x6xi32>
    %c0_i32_10 = arith.constant 0 : i32
    %25 = vector.broadcast %c0_i32_10 : i32 to vector<6x6xi32>
    %26 = arith.cmpi slt, %22, %25 : vector<6x6xi32>
    %c0_i32_11 = arith.constant 0 : i32
    %27 = arith.cmpi slt, %20, %c0_i32_11 : i32
    %28 = vector.broadcast %27 : i1 to vector<6x6xi1>
    %29 = vector.broadcast %28 : vector<6x6xi1> to vector<6x6xi1>
    %30 = arith.xori %26, %29 : vector<6x6xi1>
    %31 = arith.andi %30, %24 : vector<6x6xi1>
    %32 = vector.broadcast %20 : i32 to vector<6x6xi32>
    %33 = arith.addi %22, %32 : vector<6x6xi32>
    %34 = arith.select %31, %33, %22 : vector<6x6xi1>, vector<6x6xi32>
    %35 = tpu.iota {dimensions = array<i32: 1>} : vector<6x6xi32>
    %c2_i32_12 = arith.constant 2 : i32
    %c0_i32_13 = arith.constant 0 : i32
    %36 = arith.cmpi eq, %c2_i32_12, %c0_i32_13 : i32
    %c1_i32_14 = arith.constant 1 : i32
    %37 = arith.select %36, %c1_i32_14, %c2_i32_12 : i32
    %38 = vector.broadcast %37 : i32 to vector<6x6xi32>
    %39 = arith.remsi %35, %38 : vector<6x6xi32>
    %c0_i32_15 = arith.constant 0 : i32
    %40 = vector.broadcast %c0_i32_15 : i32 to vector<6x6xi32>
    %41 = arith.cmpi ne, %39, %40 : vector<6x6xi32>
    %c0_i32_16 = arith.constant 0 : i32
    %42 = vector.broadcast %c0_i32_16 : i32 to vector<6x6xi32>
    %43 = arith.cmpi slt, %39, %42 : vector<6x6xi32>
    %c0_i32_17 = arith.constant 0 : i32
    %44 = arith.cmpi slt, %37, %c0_i32_17 : i32
    %45 = vector.broadcast %44 : i1 to vector<6x6xi1>
    %46 = vector.broadcast %45 : vector<6x6xi1> to vector<6x6xi1>
    %47 = arith.xori %43, %46 : vector<6x6xi1>
    %48 = arith.andi %47, %41 : vector<6x6xi1>
    %49 = vector.broadcast %37 : i32 to vector<6x6xi32>
    %50 = arith.addi %39, %49 : vector<6x6xi32>
    %51 = arith.select %48, %50, %39 : vector<6x6xi1>, vector<6x6xi32>
    %52 = arith.cmpi eq, %34, %51 : vector<6x6xi32>
    %53 = vector.extract_strided_slice %15 {offsets = [0, 0], sizes = [6, 64], strides = [1, 1]} : vector<6x512xf32> to vector<6x64xf32>
    %54 = vector.extract_strided_slice %16 {offsets = [0, 0], sizes = [6, 64], strides = [1, 1]} : vector<6x512xf32> to vector<6x64xf32>
    %55 = vector.extract_strided_slice %17 {offsets = [0, 0], sizes = [6, 64], strides = [1, 1]} : vector<6x512xf32> to vector<6x64xf32>
    %cst_18 = arith.constant dense<0.000000e+00> : vector<6x6xf32>
    %56 = tpu.matmul %53, %54, %cst_18 {dimension_numbers = #tpu.dot_dimension_numbers<[1], [1], [0], [0], [0, 0, 1, 0], [], []>} : vector<6x64xf32>, vector<6x64xf32>, vector<6x6xf32> -> vector<6x6xf32>
    %cst_19 = arith.constant 1.250000e-01 : f32
    %57 = vector.broadcast %cst_19 : f32 to vector<6x6xf32>
    %58 = arith.mulf %56, %57 : vector<6x6xf32>
    %cst_20 = arith.constant -1.000000e+30 : f32
    %59 = vector.broadcast %cst_20 : f32 to vector<6x6xf32>
    %60 = arith.select %52, %58, %59 : vector<6x6xi1>, vector<6x6xf32>
    %cst_21 = arith.constant dense<0xFF800000> : vector<6xf32>
    %61 = vector.multi_reduction <maximumf>, %60, %cst_21 [1] : vector<6x6xf32> to vector<6xf32>
    %62 = vector.shape_cast %61 : vector<6xf32> to vector<6x1xf32>
    %63 = vector.broadcast %62 : vector<6x1xf32> to vector<6x6xf32>
    %64 = arith.subf %60, %63 : vector<6x6xf32>
    %65 = math.exp %64 : vector<6x6xf32>
    %cst_22 = arith.constant dense<0.000000e+00> : vector<6xf32>
    %66 = vector.multi_reduction <add>, %65, %cst_22 [1] : vector<6x6xf32> to vector<6xf32>
    %67 = vector.shape_cast %66 : vector<6xf32> to vector<6x1xf32>
    %68 = tpu.reciprocal %67 {approx = true} : vector<6x1xf32> -> vector<6x1xf32>
    %69 = vector.broadcast %68 : vector<6x1xf32> to vector<6x6xf32>
    %70 = arith.mulf %65, %69 : vector<6x6xf32>
    %cst_23 = arith.constant dense<0.000000e+00> : vector<6x64xf32>
    %71 = tpu.matmul %70, %55, %cst_23 {dimension_numbers = #tpu.dot_dimension_numbers<[1], [0], [0], [1], [0, 0, 1, 1], [], []>} : vector<6x6xf32>, vector<6x64xf32>, vector<6x64xf32> -> vector<6x64xf32>
    %72 = vector.extract_strided_slice %15 {offsets = [0, 64], sizes = [6, 64], strides = [1, 1]} : vector<6x512xf32> to vector<6x64xf32>
    %73 = vector.extract_strided_slice %16 {offsets = [0, 64], sizes = [6, 64], strides = [1, 1]} : vector<6x512xf32> to vector<6x64xf32>
    %74 = vector.extract_strided_slice %17 {offsets = [0, 64], sizes = [6, 64], strides = [1, 1]} : vector<6x512xf32> to vector<6x64xf32>
    %cst_24 = arith.constant dense<0.000000e+00> : vector<6x6xf32>
    %75 = tpu.matmul %72, %73, %cst_24 {dimension_numbers = #tpu.dot_dimension_numbers<[1], [1], [0], [0], [0, 0, 1, 0], [], []>} : vector<6x64xf32>, vector<6x64xf32>, vector<6x6xf32> -> vector<6x6xf32>
    %cst_25 = arith.constant 1.250000e-01 : f32
    %76 = vector.broadcast %cst_25 : f32 to vector<6x6xf32>
    %77 = arith.mulf %75, %76 : vector<6x6xf32>
    %cst_26 = arith.constant -1.000000e+30 : f32
    %78 = vector.broadcast %cst_26 : f32 to vector<6x6xf32>
    %79 = arith.select %52, %77, %78 : vector<6x6xi1>, vector<6x6xf32>
    %cst_27 = arith.constant dense<0xFF800000> : vector<6xf32>
    %80 = vector.multi_reduction <maximumf>, %79, %cst_27 [1] : vector<6x6xf32> to vector<6xf32>
    %81 = vector.shape_cast %80 : vector<6xf32> to vector<6x1xf32>
    %82 = vector.broadcast %81 : vector<6x1xf32> to vector<6x6xf32>
    %83 = arith.subf %79, %82 : vector<6x6xf32>
    %84 = math.exp %83 : vector<6x6xf32>
    %cst_28 = arith.constant dense<0.000000e+00> : vector<6xf32>
    %85 = vector.multi_reduction <add>, %84, %cst_28 [1] : vector<6x6xf32> to vector<6xf32>
    %86 = vector.shape_cast %85 : vector<6xf32> to vector<6x1xf32>
    %87 = tpu.reciprocal %86 {approx = true} : vector<6x1xf32> -> vector<6x1xf32>
    %88 = vector.broadcast %87 : vector<6x1xf32> to vector<6x6xf32>
    %89 = arith.mulf %84, %88 : vector<6x6xf32>
    %cst_29 = arith.constant dense<0.000000e+00> : vector<6x64xf32>
    %90 = tpu.matmul %89, %74, %cst_29 {dimension_numbers = #tpu.dot_dimension_numbers<[1], [0], [0], [1], [0, 0, 1, 1], [], []>} : vector<6x6xf32>, vector<6x64xf32>, vector<6x64xf32> -> vector<6x64xf32>
    %91 = vector.extract_strided_slice %15 {offsets = [0, 128], sizes = [6, 64], strides = [1, 1]} : vector<6x512xf32> to vector<6x64xf32>
    %92 = vector.extract_strided_slice %16 {offsets = [0, 128], sizes = [6, 64], strides = [1, 1]} : vector<6x512xf32> to vector<6x64xf32>
    %93 = vector.extract_strided_slice %17 {offsets = [0, 128], sizes = [6, 64], strides = [1, 1]} : vector<6x512xf32> to vector<6x64xf32>
    %cst_30 = arith.constant dense<0.000000e+00> : vector<6x6xf32>
    %94 = tpu.matmul %91, %92, %cst_30 {dimension_numbers = #tpu.dot_dimension_numbers<[1], [1], [0], [0], [0, 0, 1, 0], [], []>} : vector<6x64xf32>, vector<6x64xf32>, vector<6x6xf32> -> vector<6x6xf32>
    %cst_31 = arith.constant 1.250000e-01 : f32
    %95 = vector.broadcast %cst_31 : f32 to vector<6x6xf32>
    %96 = arith.mulf %94, %95 : vector<6x6xf32>
    %cst_32 = arith.constant -1.000000e+30 : f32
    %97 = vector.broadcast %cst_32 : f32 to vector<6x6xf32>
    %98 = arith.select %52, %96, %97 : vector<6x6xi1>, vector<6x6xf32>
    %cst_33 = arith.constant dense<0xFF800000> : vector<6xf32>
    %99 = vector.multi_reduction <maximumf>, %98, %cst_33 [1] : vector<6x6xf32> to vector<6xf32>
    %100 = vector.shape_cast %99 : vector<6xf32> to vector<6x1xf32>
    %101 = vector.broadcast %100 : vector<6x1xf32> to vector<6x6xf32>
    %102 = arith.subf %98, %101 : vector<6x6xf32>
    %103 = math.exp %102 : vector<6x6xf32>
    %cst_34 = arith.constant dense<0.000000e+00> : vector<6xf32>
    %104 = vector.multi_reduction <add>, %103, %cst_34 [1] : vector<6x6xf32> to vector<6xf32>
    %105 = vector.shape_cast %104 : vector<6xf32> to vector<6x1xf32>
    %106 = tpu.reciprocal %105 {approx = true} : vector<6x1xf32> -> vector<6x1xf32>
    %107 = vector.broadcast %106 : vector<6x1xf32> to vector<6x6xf32>
    %108 = arith.mulf %103, %107 : vector<6x6xf32>
    %cst_35 = arith.constant dense<0.000000e+00> : vector<6x64xf32>
    %109 = tpu.matmul %108, %93, %cst_35 {dimension_numbers = #tpu.dot_dimension_numbers<[1], [0], [0], [1], [0, 0, 1, 1], [], []>} : vector<6x6xf32>, vector<6x64xf32>, vector<6x64xf32> -> vector<6x64xf32>
    %110 = vector.extract_strided_slice %15 {offsets = [0, 192], sizes = [6, 64], strides = [1, 1]} : vector<6x512xf32> to vector<6x64xf32>
    %111 = vector.extract_strided_slice %16 {offsets = [0, 192], sizes = [6, 64], strides = [1, 1]} : vector<6x512xf32> to vector<6x64xf32>
    %112 = vector.extract_strided_slice %17 {offsets = [0, 192], sizes = [6, 64], strides = [1, 1]} : vector<6x512xf32> to vector<6x64xf32>
    %cst_36 = arith.constant dense<0.000000e+00> : vector<6x6xf32>
    %113 = tpu.matmul %110, %111, %cst_36 {dimension_numbers = #tpu.dot_dimension_numbers<[1], [1], [0], [0], [0, 0, 1, 0], [], []>} : vector<6x64xf32>, vector<6x64xf32>, vector<6x6xf32> -> vector<6x6xf32>
    %cst_37 = arith.constant 1.250000e-01 : f32
    %114 = vector.broadcast %cst_37 : f32 to vector<6x6xf32>
    %115 = arith.mulf %113, %114 : vector<6x6xf32>
    %cst_38 = arith.constant -1.000000e+30 : f32
    %116 = vector.broadcast %cst_38 : f32 to vector<6x6xf32>
    %117 = arith.select %52, %115, %116 : vector<6x6xi1>, vector<6x6xf32>
    %cst_39 = arith.constant dense<0xFF800000> : vector<6xf32>
    %118 = vector.multi_reduction <maximumf>, %117, %cst_39 [1] : vector<6x6xf32> to vector<6xf32>
    %119 = vector.shape_cast %118 : vector<6xf32> to vector<6x1xf32>
    %120 = vector.broadcast %119 : vector<6x1xf32> to vector<6x6xf32>
    %121 = arith.subf %117, %120 : vector<6x6xf32>
    %122 = math.exp %121 : vector<6x6xf32>
    %cst_40 = arith.constant dense<0.000000e+00> : vector<6xf32>
    %123 = vector.multi_reduction <add>, %122, %cst_40 [1] : vector<6x6xf32> to vector<6xf32>
    %124 = vector.shape_cast %123 : vector<6xf32> to vector<6x1xf32>
    %125 = tpu.reciprocal %124 {approx = true} : vector<6x1xf32> -> vector<6x1xf32>
    %126 = vector.broadcast %125 : vector<6x1xf32> to vector<6x6xf32>
    %127 = arith.mulf %122, %126 : vector<6x6xf32>
    %cst_41 = arith.constant dense<0.000000e+00> : vector<6x64xf32>
    %128 = tpu.matmul %127, %112, %cst_41 {dimension_numbers = #tpu.dot_dimension_numbers<[1], [0], [0], [1], [0, 0, 1, 1], [], []>} : vector<6x6xf32>, vector<6x64xf32>, vector<6x64xf32> -> vector<6x64xf32>
    %129 = vector.extract_strided_slice %15 {offsets = [0, 256], sizes = [6, 64], strides = [1, 1]} : vector<6x512xf32> to vector<6x64xf32>
    %130 = vector.extract_strided_slice %16 {offsets = [0, 256], sizes = [6, 64], strides = [1, 1]} : vector<6x512xf32> to vector<6x64xf32>
    %131 = vector.extract_strided_slice %17 {offsets = [0, 256], sizes = [6, 64], strides = [1, 1]} : vector<6x512xf32> to vector<6x64xf32>
    %cst_42 = arith.constant dense<0.000000e+00> : vector<6x6xf32>
    %132 = tpu.matmul %129, %130, %cst_42 {dimension_numbers = #tpu.dot_dimension_numbers<[1], [1], [0], [0], [0, 0, 1, 0], [], []>} : vector<6x64xf32>, vector<6x64xf32>, vector<6x6xf32> -> vector<6x6xf32>
    %cst_43 = arith.constant 1.250000e-01 : f32
    %133 = vector.broadcast %cst_43 : f32 to vector<6x6xf32>
    %134 = arith.mulf %132, %133 : vector<6x6xf32>
    %cst_44 = arith.constant -1.000000e+30 : f32
    %135 = vector.broadcast %cst_44 : f32 to vector<6x6xf32>
    %136 = arith.select %52, %134, %135 : vector<6x6xi1>, vector<6x6xf32>
    %cst_45 = arith.constant dense<0xFF800000> : vector<6xf32>
    %137 = vector.multi_reduction <maximumf>, %136, %cst_45 [1] : vector<6x6xf32> to vector<6xf32>
    %138 = vector.shape_cast %137 : vector<6xf32> to vector<6x1xf32>
    %139 = vector.broadcast %138 : vector<6x1xf32> to vector<6x6xf32>
    %140 = arith.subf %136, %139 : vector<6x6xf32>
    %141 = math.exp %140 : vector<6x6xf32>
    %cst_46 = arith.constant dense<0.000000e+00> : vector<6xf32>
    %142 = vector.multi_reduction <add>, %141, %cst_46 [1] : vector<6x6xf32> to vector<6xf32>
    %143 = vector.shape_cast %142 : vector<6xf32> to vector<6x1xf32>
    %144 = tpu.reciprocal %143 {approx = true} : vector<6x1xf32> -> vector<6x1xf32>
    %145 = vector.broadcast %144 : vector<6x1xf32> to vector<6x6xf32>
    %146 = arith.mulf %141, %145 : vector<6x6xf32>
    %cst_47 = arith.constant dense<0.000000e+00> : vector<6x64xf32>
    %147 = tpu.matmul %146, %131, %cst_47 {dimension_numbers = #tpu.dot_dimension_numbers<[1], [0], [0], [1], [0, 0, 1, 1], [], []>} : vector<6x6xf32>, vector<6x64xf32>, vector<6x64xf32> -> vector<6x64xf32>
    %148 = vector.extract_strided_slice %15 {offsets = [0, 320], sizes = [6, 64], strides = [1, 1]} : vector<6x512xf32> to vector<6x64xf32>
    %149 = vector.extract_strided_slice %16 {offsets = [0, 320], sizes = [6, 64], strides = [1, 1]} : vector<6x512xf32> to vector<6x64xf32>
    %150 = vector.extract_strided_slice %17 {offsets = [0, 320], sizes = [6, 64], strides = [1, 1]} : vector<6x512xf32> to vector<6x64xf32>
    %cst_48 = arith.constant dense<0.000000e+00> : vector<6x6xf32>
    %151 = tpu.matmul %148, %149, %cst_48 {dimension_numbers = #tpu.dot_dimension_numbers<[1], [1], [0], [0], [0, 0, 1, 0], [], []>} : vector<6x64xf32>, vector<6x64xf32>, vector<6x6xf32> -> vector<6x6xf32>
    %cst_49 = arith.constant 1.250000e-01 : f32
    %152 = vector.broadcast %cst_49 : f32 to vector<6x6xf32>
    %153 = arith.mulf %151, %152 : vector<6x6xf32>
    %cst_50 = arith.constant -1.000000e+30 : f32
    %154 = vector.broadcast %cst_50 : f32 to vector<6x6xf32>
    %155 = arith.select %52, %153, %154 : vector<6x6xi1>, vector<6x6xf32>
    %cst_51 = arith.constant dense<0xFF800000> : vector<6xf32>
    %156 = vector.multi_reduction <maximumf>, %155, %cst_51 [1] : vector<6x6xf32> to vector<6xf32>
    %157 = vector.shape_cast %156 : vector<6xf32> to vector<6x1xf32>
    %158 = vector.broadcast %157 : vector<6x1xf32> to vector<6x6xf32>
    %159 = arith.subf %155, %158 : vector<6x6xf32>
    %160 = math.exp %159 : vector<6x6xf32>
    %cst_52 = arith.constant dense<0.000000e+00> : vector<6xf32>
    %161 = vector.multi_reduction <add>, %160, %cst_52 [1] : vector<6x6xf32> to vector<6xf32>
    %162 = vector.shape_cast %161 : vector<6xf32> to vector<6x1xf32>
    %163 = tpu.reciprocal %162 {approx = true} : vector<6x1xf32> -> vector<6x1xf32>
    %164 = vector.broadcast %163 : vector<6x1xf32> to vector<6x6xf32>
    %165 = arith.mulf %160, %164 : vector<6x6xf32>
    %cst_53 = arith.constant dense<0.000000e+00> : vector<6x64xf32>
    %166 = tpu.matmul %165, %150, %cst_53 {dimension_numbers = #tpu.dot_dimension_numbers<[1], [0], [0], [1], [0, 0, 1, 1], [], []>} : vector<6x6xf32>, vector<6x64xf32>, vector<6x64xf32> -> vector<6x64xf32>
    %167 = vector.extract_strided_slice %15 {offsets = [0, 384], sizes = [6, 64], strides = [1, 1]} : vector<6x512xf32> to vector<6x64xf32>
    %168 = vector.extract_strided_slice %16 {offsets = [0, 384], sizes = [6, 64], strides = [1, 1]} : vector<6x512xf32> to vector<6x64xf32>
    %169 = vector.extract_strided_slice %17 {offsets = [0, 384], sizes = [6, 64], strides = [1, 1]} : vector<6x512xf32> to vector<6x64xf32>
    %cst_54 = arith.constant dense<0.000000e+00> : vector<6x6xf32>
    %170 = tpu.matmul %167, %168, %cst_54 {dimension_numbers = #tpu.dot_dimension_numbers<[1], [1], [0], [0], [0, 0, 1, 0], [], []>} : vector<6x64xf32>, vector<6x64xf32>, vector<6x6xf32> -> vector<6x6xf32>
    %cst_55 = arith.constant 1.250000e-01 : f32
    %171 = vector.broadcast %cst_55 : f32 to vector<6x6xf32>
    %172 = arith.mulf %170, %171 : vector<6x6xf32>
    %cst_56 = arith.constant -1.000000e+30 : f32
    %173 = vector.broadcast %cst_56 : f32 to vector<6x6xf32>
    %174 = arith.select %52, %172, %173 : vector<6x6xi1>, vector<6x6xf32>
    %cst_57 = arith.constant dense<0xFF800000> : vector<6xf32>
    %175 = vector.multi_reduction <maximumf>, %174, %cst_57 [1] : vector<6x6xf32> to vector<6xf32>
    %176 = vector.shape_cast %175 : vector<6xf32> to vector<6x1xf32>
    %177 = vector.broadcast %176 : vector<6x1xf32> to vector<6x6xf32>
    %178 = arith.subf %174, %177 : vector<6x6xf32>
    %179 = math.exp %178 : vector<6x6xf32>
    %cst_58 = arith.constant dense<0.000000e+00> : vector<6xf32>
    %180 = vector.multi_reduction <add>, %179, %cst_58 [1] : vector<6x6xf32> to vector<6xf32>
    %181 = vector.shape_cast %180 : vector<6xf32> to vector<6x1xf32>
    %182 = tpu.reciprocal %181 {approx = true} : vector<6x1xf32> -> vector<6x1xf32>
    %183 = vector.broadcast %182 : vector<6x1xf32> to vector<6x6xf32>
    %184 = arith.mulf %179, %183 : vector<6x6xf32>
    %cst_59 = arith.constant dense<0.000000e+00> : vector<6x64xf32>
    %185 = tpu.matmul %184, %169, %cst_59 {dimension_numbers = #tpu.dot_dimension_numbers<[1], [0], [0], [1], [0, 0, 1, 1], [], []>} : vector<6x6xf32>, vector<6x64xf32>, vector<6x64xf32> -> vector<6x64xf32>
    %186 = vector.extract_strided_slice %15 {offsets = [0, 448], sizes = [6, 64], strides = [1, 1]} : vector<6x512xf32> to vector<6x64xf32>
    %187 = vector.extract_strided_slice %16 {offsets = [0, 448], sizes = [6, 64], strides = [1, 1]} : vector<6x512xf32> to vector<6x64xf32>
    %188 = vector.extract_strided_slice %17 {offsets = [0, 448], sizes = [6, 64], strides = [1, 1]} : vector<6x512xf32> to vector<6x64xf32>
    %cst_60 = arith.constant dense<0.000000e+00> : vector<6x6xf32>
    %189 = tpu.matmul %186, %187, %cst_60 {dimension_numbers = #tpu.dot_dimension_numbers<[1], [1], [0], [0], [0, 0, 1, 0], [], []>} : vector<6x64xf32>, vector<6x64xf32>, vector<6x6xf32> -> vector<6x6xf32>
    %cst_61 = arith.constant 1.250000e-01 : f32
    %190 = vector.broadcast %cst_61 : f32 to vector<6x6xf32>
    %191 = arith.mulf %189, %190 : vector<6x6xf32>
    %cst_62 = arith.constant -1.000000e+30 : f32
    %192 = vector.broadcast %cst_62 : f32 to vector<6x6xf32>
    %193 = arith.select %52, %191, %192 : vector<6x6xi1>, vector<6x6xf32>
    %cst_63 = arith.constant dense<0xFF800000> : vector<6xf32>
    %194 = vector.multi_reduction <maximumf>, %193, %cst_63 [1] : vector<6x6xf32> to vector<6xf32>
    %195 = vector.shape_cast %194 : vector<6xf32> to vector<6x1xf32>
    %196 = vector.broadcast %195 : vector<6x1xf32> to vector<6x6xf32>
    %197 = arith.subf %193, %196 : vector<6x6xf32>
    %198 = math.exp %197 : vector<6x6xf32>
    %cst_64 = arith.constant dense<0.000000e+00> : vector<6xf32>
    %199 = vector.multi_reduction <add>, %198, %cst_64 [1] : vector<6x6xf32> to vector<6xf32>
    %200 = vector.shape_cast %199 : vector<6xf32> to vector<6x1xf32>
    %201 = tpu.reciprocal %200 {approx = true} : vector<6x1xf32> -> vector<6x1xf32>
    %202 = vector.broadcast %201 : vector<6x1xf32> to vector<6x6xf32>
    %203 = arith.mulf %198, %202 : vector<6x6xf32>
    %cst_65 = arith.constant dense<0.000000e+00> : vector<6x64xf32>
    %204 = tpu.matmul %203, %188, %cst_65 {dimension_numbers = #tpu.dot_dimension_numbers<[1], [0], [0], [1], [0, 0, 1, 1], [], []>} : vector<6x6xf32>, vector<6x64xf32>, vector<6x64xf32> -> vector<6x64xf32>
    %205 = tpu.concatenate %71, %90, %109, %128, %147, %166, %185, %204 in 1 : vector<6x64xf32>, vector<6x64xf32>, vector<6x64xf32>, vector<6x64xf32>, vector<6x64xf32>, vector<6x64xf32>, vector<6x64xf32>, vector<6x64xf32> -> vector<6x512xf32>
    %c0_66 = arith.constant 0 : index
    %c0_67 = arith.constant 0 : index
    %206 = vector.load %arg5[%c0_66, %c0_67] : memref<512x128xbf16, #tpu.memory_space<vmem>>, vector<512x128xbf16>
    %207 = arith.extf %206 : vector<512x128xbf16> to vector<512x128xf32>
    %cst_68 = arith.constant dense<0.000000e+00> : vector<6x128xf32>
    %208 = tpu.matmul %205, %207, %cst_68 {dimension_numbers = #tpu.dot_dimension_numbers<[1], [0], [0], [1], [0, 0, 1, 1], [], []>} : vector<6x512xf32>, vector<512x128xf32>, vector<6x128xf32> -> vector<6x128xf32>
    %c0_69 = arith.constant 0 : index
    %c0_70 = arith.constant 0 : index
    %209 = vector.load %arg6[%c0_69, %c0_70] : memref<1x128xf32, #tpu.memory_space<vmem>>, vector<1x128xf32>
    %210 = vector.broadcast %209 : vector<1x128xf32> to vector<6x128xf32>
    %211 = arith.addf %208, %210 : vector<6x128xf32>
    %c0_71 = arith.constant 0 : index
    %c0_72 = arith.constant 0 : index
    %212 = vector.load %arg7[%c0_71, %c0_72] : memref<2x128xi32, #tpu.memory_space<vmem>>, vector<2x128xi32>
    %cst_73 = arith.constant 0.000000e+00 : f32
    %213 = vector.broadcast %cst_73 : f32 to vector<2x128xf32>
    %c0_i32_74 = arith.constant 0 : i32
    %214 = vector.broadcast %c0_i32_74 : i32 to vector<2x128xi32>
    %215 = arith.cmpi eq, %212, %214 : vector<2x128xi32>
    %216 = vector.extract_strided_slice %211 {offsets = [0, 0], sizes = [2, 128], strides = [1, 1]} : vector<6x128xf32> to vector<2x128xf32>
    %cst_75 = arith.constant 0.000000e+00 : f32
    %217 = vector.broadcast %cst_75 : f32 to vector<2x128xf32>
    %218 = arith.select %215, %216, %217 : vector<2x128xi1>, vector<2x128xf32>
    %219 = arith.addf %213, %218 : vector<2x128xf32>
    %c1_i32_76 = arith.constant 1 : i32
    %220 = vector.broadcast %c1_i32_76 : i32 to vector<2x128xi32>
    %221 = arith.cmpi eq, %212, %220 : vector<2x128xi32>
    %222 = vector.extract_strided_slice %211 {offsets = [2, 0], sizes = [2, 128], strides = [1, 1]} : vector<6x128xf32> to vector<2x128xf32>
    %cst_77 = arith.constant 0.000000e+00 : f32
    %223 = vector.broadcast %cst_77 : f32 to vector<2x128xf32>
    %224 = arith.select %221, %222, %223 : vector<2x128xi1>, vector<2x128xf32>
    %225 = arith.addf %219, %224 : vector<2x128xf32>
    %c2_i32_78 = arith.constant 2 : i32
    %226 = vector.broadcast %c2_i32_78 : i32 to vector<2x128xi32>
    %227 = arith.cmpi eq, %212, %226 : vector<2x128xi32>
    %228 = vector.extract_strided_slice %211 {offsets = [4, 0], sizes = [2, 128], strides = [1, 1]} : vector<6x128xf32> to vector<2x128xf32>
    %cst_79 = arith.constant 0.000000e+00 : f32
    %229 = vector.broadcast %cst_79 : f32 to vector<2x128xf32>
    %230 = arith.select %227, %228, %229 : vector<2x128xi1>, vector<2x128xf32>
    %231 = arith.addf %225, %230 : vector<2x128xf32>
    %c0_80 = arith.constant 0 : index
    %c0_81 = arith.constant 0 : index
    %232 = vector.load %arg8[%c0_80, %c0_81] : memref<2x128xf32, #tpu.memory_space<vmem>>, vector<2x128xf32>
    tpu.vector_store %arg8[%c0_80, %c0_81], %231 {strides = array<i32>} : memref<2x128xf32, #tpu.memory_space<vmem>>, vector<2x128xf32>,
    return
  }
  func.func @transform_0(%arg0: i32) -> (i32, i32) {
    %c0_i32 = arith.constant 0 : i32
    %c0_i32_0 = arith.constant 0 : i32
    %c0_i32_1 = arith.constant 0 : i32
    return %c0_i32, %c0_i32_0 : i32, i32
  }
  func.func @transform_1(%arg0: i32) -> (i32, i32) {
    %c0_i32 = arith.constant 0 : i32
    %c0_i32_0 = arith.constant 0 : i32
    %c0_i32_1 = arith.constant 0 : i32
    return %c0_i32, %c0_i32_0 : i32, i32
  }
  func.func @transform_2(%arg0: i32) -> (i32, i32) {
    %c0_i32 = arith.constant 0 : i32
    %c0_i32_0 = arith.constant 0 : i32
    %c0_i32_1 = arith.constant 0 : i32
    return %c0_i32, %c0_i32_0 : i32, i32
  }
  func.func @transform_3(%arg0: i32) -> (i32, i32) {
    %c0_i32 = arith.constant 0 : i32
    %c0_i32_0 = arith.constant 0 : i32
    %c0_i32_1 = arith.constant 0 : i32
    return %c0_i32, %c0_i32_0 : i32, i32
  }
  func.func @transform_4(%arg0: i32) -> (i32, i32) {
    %c0_i32 = arith.constant 0 : i32
    %c0_i32_0 = arith.constant 0 : i32
    %c0_i32_1 = arith.constant 0 : i32
    return %c0_i32, %c0_i32_0 : i32, i32
  }
  func.func @transform_5(%arg0: i32) -> (i32, i32) {
    %c0_i32 = arith.constant 0 : i32
    %c0_i32_0 = arith.constant 0 : i32
    %c0_i32_1 = arith.constant 0 : i32
    return %c0_i32, %c0_i32_0 : i32, i32
  }
  func.func @transform_6(%arg0: i32) -> (i32, i32) {
    %c0_i32 = arith.constant 0 : i32
    %c0_i32_0 = arith.constant 0 : i32
    %c0_i32_1 = arith.constant 0 : i32
    return %c0_i32, %c0_i32_0 : i32, i32
  }
  func.func @transform_7(%arg0: i32) -> (i32, i32) {
    %c0_i32 = arith.constant 0 : i32
    %c0_i32_0 = arith.constant 0 : i32
    %c0_i32_1 = arith.constant 0 : i32
    return %c0_i32, %c0_i32_0 : i32, i32
  }
}

</mosaic_0001>

<bundles_post_ra>
// kernel: _lambda_.1
= control target key start
LH: loop header
LB: loop body
LE: loop exit
PB: predicated region body
PF: predicated region fallthrough
CT: control target
= control target key end

     0   :  { %v3649_v5 = vmov 0.0|0.0   ;;  %v3650_v8 = vmov 0.0   ;;  %vm3651_vm0 = vmmov 0   ;;  %vm75_vm1 = vcmask 654336   ;;  %s4378_s0 = inlined_call_operand.vmem [shape: f32[2,80], index: 0, kind: input, shape index: {}]   ;;  %s4379_s1 = inlined_call_operand.vmem [shape: f32[80,384], index: 1, kind: input, shape index: {}]   ;;  %s4380_s2 = inlined_call_operand.vmem [shape: f32[1,384], index: 2, kind: input, shape index: {}]   ;;  %s4381_s3 = inlined_call_operand.vmem [shape: bf16[128,1536], index: 3, kind: input, shape index: {}]   ;;  %s4382_s4 = inlined_call_operand.vmem [shape: bf16[512,128], index: 4, kind: input, shape index: {}]   ;;  %s4383_s5 = inlined_call_operand.vmem [shape: f32[1,128], index: 5, kind: input, shape index: {}]   ;;  %s4384_s6 = inlined_call_operand.vmem [shape: s32[2,128], index: 6, kind: input, shape index: {}]   ;;  %s4385_s7 = inlined_call_operand.hbm [shape: f32[2,128], index: 7, kind: output, shape index: {}]  }
   0x1   :  { %v29_v0 = vld [vmem:[%s4379_s1 + $0x8] sm:$0xff]  ;;  %v32_v1 = vld [vmem:[%s4379_s1 + $0x20] sm:$0xff]  ;;  %v31_v4 = vld [vmem:[%s4379_s1 + $0x18] sm:$0xff]  ;;  %3067 = vmatprep.subr.bf16.mxu1 %v3649_v5  ;;  %143 = vmatprep.mubr.f32.mxu0 %v3650_v8 }
   0x2   :  { %v28_v2 = vld [vmem:[%s4379_s1] sm:$0xff]  ;;  %v3047_v3 = vpack.c.bf16 %v32_v1, %v29_v0  ;;  %v30_v6 = vld [vmem:[%s4379_s1 + $0x10] sm:$0xff]  ;;  %v33_v7 = vld [vmem:[%s4379_s1 + $0x28] sm:$0xff]  ;;  %2964 = vmatprep.mubr.msk.f32.mxu1 %vm3651_vm0, %v3650_v8 }
   0x3   :  { %v3049_v9 = vpack.c.bf16 %v31_v4, %v28_v2  ;;  %v3068_v10 = vpack.c.bf16 %v33_v7, %v30_v6  ;;  %v35_v11 = vld [vmem:[%s4379_s1 + $0x38] sm:$0xff]  ;;  %v38_v12 = vld [vmem:[%s4379_s1 + $0x50] sm:$0xff]  ;;  %v37_v15 = vld [vmem:[%s4379_s1 + $0x48] sm:$0xff] }
   0x4   :  { %v34_v13 = vld [vmem:[%s4379_s1 + $0x30] sm:$0xff]  ;;  %3048 = vmatprep.subr.bf16.mxu0 %v3047_v3  ;;  %v3051_v14 = vpack.c.bf16 %v38_v12, %v35_v11  ;;  %v36_v16 = vld [vmem:[%s4379_s1 + $0x40] sm:$0xff]  ;;  %v39_v17 = vld [vmem:[%s4379_s1 + $0x58] sm:$0xff] }
   0x5   :  { %3050 = vmatpush1.bf16.msra.mxu0 %v3049_v9  ;;  %3069 = vmatpush3.bf16.msra.mxu1 %v3068_v10  ;;  %v3053_v18 = vpack.c.bf16 %v37_v15, %v34_v13  ;;  %v3071_v19 = vpack.c.bf16 %v39_v17, %v36_v16  ;;  %v41_v20 = vld [vmem:[%s4379_s1 + $0x68] sm:$0xff]  ;;  %v44_v21 = vld [vmem:[%s4379_s1 + $0x80] sm:$0xff]  ;;  %v43_v24 = vld [vmem:[%s4379_s1 + $0x78] sm:$0xff] }
   0x6   :  { %v40_v22 = vld [vmem:[%s4379_s1 + $0x60] sm:$0xff]  ;;  %3052 = vmatprep.subr.bf16.mxu0 %v3051_v14  ;;  %3070 = vmatprep.subr.bf16.mxu1 %v3649_v5  ;;  %v3055_v23 = vpack.c.bf16 %v44_v21, %v41_v20  ;;  %v42_v25 = vld [vmem:[%s4379_s1 + $0x70] sm:$0xff]  ;;  %v45_v26 = vld [vmem:[%s4379_s1 + $0x88] sm:$0xff] }
   0x7   :  { %v47_v27 = vld [vmem:[%s4379_s1 + $0x98] sm:$0xff]  ;;  %v50_v28 = vld [vmem:[%s4379_s1 + $0xb0] sm:$0xff]  ;;  %v3057_v29 = vpack.c.bf16 %v43_v24, %v40_v22  ;;  %v3074_v30 = vpack.c.bf16 %v45_v26, %v42_v25  ;;  %v49_v32 = vld [vmem:[%s4379_s1 + $0xa8] sm:$0xff] }
   0x8   :  { %v46_v31 = vld [vmem:[%s4379_s1 + $0x90] sm:$0xff]  ;;  %v3059_v33 = vpack.c.bf16 %v50_v28, %v47_v27  ;;  %v48_v34 = vld [vmem:[%s4379_s1 + $0xa0] sm:$0xff]  ;;  %v51_v35 = vld [vmem:[%s4379_s1 + $0xb8] sm:$0xff] }
   0x9   :  { %3054 = vmatpush1.bf16.msra.mxu0 %v3053_v18  ;;  %3072 = vmatpush3.bf16.msra.mxu1 %v3071_v19  ;;  %v53_v36 = vld [vmem:[%s4379_s1 + $0xc8] sm:$0xff]  ;;  %v56_v37 = vld [vmem:[%s4379_s1 + $0xe0] sm:$0xff]  ;;  %v3061_v39 = vpack.c.bf16 %v49_v32, %v46_v31  ;;  %v3077_v40 = vpack.c.bf16 %v51_v35, %v48_v34  ;;  %v55_v41 = vld [vmem:[%s4379_s1 + $0xd8] sm:$0xff] }
   0xa   :  { %3056 = vmatprep.subr.bf16.mxu0 %v3055_v23  ;;  %3073 = vmatprep.subr.bf16.mxu1 %v3649_v5  ;;  %v52_v38 = vld [vmem:[%s4379_s1 + $0xc0] sm:$0xff]  ;;  %v54_v42 = vld [vmem:[%s4379_s1 + $0xd0] sm:$0xff]  ;;  %v3063_v43 = vpack.c.bf16 %v56_v37, %v53_v36  ;;  %v57_v44 = vld [vmem:[%s4379_s1 + $0xe8] sm:$0xff] }
   0xb   :  { %v3065_v45 = vpack.c.bf16 %v55_v41, %v52_v38  ;;  %v3080_v46 = vpack.c.bf16 %v57_v44, %v54_v42  ;;  %v3449_v47 = vld [vmem:[%s4381_s3 + $0x4] ss:$48 sps:$4 sm:$0xff]   ;;  %v3452_v48 = vld [vmem:[%s4381_s3 + $0xc] ss:$48 sps:$4 sm:$0xff]   ;;  %v27_v49 = vld [vmem:[%s4378_s0] sm:$0x3] }
   0xc   :  { %v3451_v50 = vld [vmem:[%s4381_s3] ss:$48 sps:$4 sm:$0xff]   ;;  %v3454_v51 = vld [vmem:[%s4381_s3 + $0x8] ss:$48 sps:$4 sm:$0xff]   ;;  %v3455_v52 = vld [vmem:[%s4381_s3 + $0x64] ss:$48 sps:$4 sm:$0xff]  }
   0xd   :  { %3058 = vmatpush1.bf16.msra.mxu0 %v3057_v29  ;;  %3075 = vmatpush3.bf16.msra.mxu1 %v3074_v30  ;;  %v3458_v53 = vld [vmem:[%s4381_s3 + $0x6c] ss:$48 sps:$4 sm:$0xff]   ;;  %v3457_v54 = vld [vmem:[%s4381_s3 + $0x60] ss:$48 sps:$4 sm:$0xff]   ;;  %v3460_v55 = vld [vmem:[%s4381_s3 + $0x68] ss:$48 sps:$4 sm:$0xff]  }
   0xe   :  { %3060 = vmatprep.subr.bf16.mxu0 %v3059_v33  ;;  %3076 = vmatprep.subr.bf16.mxu1 %v3649_v5  ;;  %v3461_v56 = vld [vmem:[%s4381_s3 + $0xc4] ss:$48 sps:$4 sm:$0xff]   ;;  %v3464_v57 = vld [vmem:[%s4381_s3 + $0xcc] ss:$48 sps:$4 sm:$0xff]   ;;  %v3463_v58 = vld [vmem:[%s4381_s3 + $0xc0] ss:$48 sps:$4 sm:$0xff]  }
   0xf   :  { %v3466_v59 = vld [vmem:[%s4381_s3 + $0xc8] ss:$48 sps:$4 sm:$0xff]   ;;  %v3467_v60 = vld [vmem:[%s4381_s3 + $0x124] ss:$48 sps:$4 sm:$0xff]   ;;  %v3470_v61 = vld [vmem:[%s4381_s3 + $0x12c] ss:$48 sps:$4 sm:$0xff]  }
  0x10   :  { %v3469_v62 = vld [vmem:[%s4381_s3 + $0x120] ss:$48 sps:$4 sm:$0xff]   ;;  %v3472_v63 = vld [vmem:[%s4381_s3 + $0x128] ss:$48 sps:$4 sm:$0xff]   ;;  %v3473_v0 = vld [vmem:[%s4381_s3 + $0x184] ss:$48 sps:$4 sm:$0xff]  }
  0x11   :  { %3062 = vmatpush1.bf16.msra.mxu0 %v3061_v39  ;;  %3078 = vmatpush3.bf16.msra.mxu1 %v3077_v40  ;;  %v3476_v1 = vld [vmem:[%s4381_s3 + $0x18c] ss:$48 sps:$4 sm:$0xff]   ;;  %v3475_v2 = vld [vmem:[%s4381_s3 + $0x180] ss:$48 sps:$4 sm:$0xff]   ;;  %v3478_v3 = vld [vmem:[%s4381_s3 + $0x188] ss:$48 sps:$4 sm:$0xff]  }
  0x12   :  { %3064 = vmatprep.subr.bf16.mxu0 %v3063_v43  ;;  %3079 = vmatprep.subr.bf16.mxu1 %v3649_v5  ;;  %v3479_v4 = vld [vmem:[%s4381_s3 + $0x1e4] ss:$48 sps:$4 sm:$0xff]   ;;  %v3482_v5 = vld [vmem:[%s4381_s3 + $0x1ec] ss:$48 sps:$4 sm:$0xff]   ;;  %v3481_v6 = vld [vmem:[%s4381_s3 + $0x1e0] ss:$48 sps:$4 sm:$0xff]  }
  0x13   :  { %v3484_v7 = vld [vmem:[%s4381_s3 + $0x1e8] ss:$48 sps:$4 sm:$0xff]  }
  0x15   :  { %3066 = vmatpush1.bf16.msra.mxu0 %v3065_v45  ;;  %3081 = vmatpush3.bf16.msra.mxu1 %v3080_v46 }
  0x16   :  { %3083 = vmatprep.subr.bf16.mxu0 %v3449_v47  ;;  %3115 = vmatprep.subr.bf16.mxu1 %v3452_v48 }
  0x18   :  { %2637 = vmatmul.mubr.msk.f32.vlgmr.msra.gmra.mrb[0].mxu0 %vm75_vm1, %v27_v49  ;;  %2965 = vmatmul.mubr.msk.f32.vlgmr.msra.gmra.mrb[0].mxu1 %vm75_vm1, %v27_v49 }
  0x19   :  { %3085 = vmatpush1.bf16.msra.mxu0 %v3451_v50  ;;  %3117 = vmatpush1.bf16.msra.mxu1 %v3454_v51 }
  0x1a   :  { %3087 = vmatprep.subr.bf16.mxu0 %v3455_v52  ;;  %3119 = vmatprep.subr.bf16.mxu1 %v3458_v53 }
  0x1b   :  { %585 = vmatprep.mubr.f32.mxu0 %v3650_v8  ;;  %656 = vmatprep.mubr.f32.mxu1 %v3650_v8 }
  0x1d   :  { %3089 = vmatpush1.bf16.msra.mxu0 %v3457_v54  ;;  %3121 = vmatpush1.bf16.msra.mxu1 %v3460_v55 }
  0x1e   :  { %3091 = vmatprep.subr.bf16.mxu0 %v3461_v56  ;;  %3123 = vmatprep.subr.bf16.mxu1 %v3464_v57 }
  0x21   :  { %3093 = vmatpush1.bf16.msra.mxu0 %v3463_v58  ;;  %3125 = vmatpush1.bf16.msra.mxu1 %v3466_v59 }
  0x22   :  { %3095 = vmatprep.subr.bf16.mxu0 %v3467_v60  ;;  %3127 = vmatprep.subr.bf16.mxu1 %v3470_v61 }
  0x25   :  { %3097 = vmatpush1.bf16.msra.mxu0 %v3469_v62  ;;  %3129 = vmatpush1.bf16.msra.mxu1 %v3472_v63 }
  0x26   :  { %3099 = vmatprep.subr.bf16.mxu0 %v3473_v0  ;;  %3131 = vmatprep.subr.bf16.mxu1 %v3476_v1 }
  0x29   :  { %3101 = vmatpush1.bf16.msra.mxu0 %v3475_v2  ;;  %3133 = vmatpush1.bf16.msra.mxu1 %v3478_v3 }
  0x2a   :  { %3103 = vmatprep.subr.bf16.mxu0 %v3479_v4  ;;  %3135 = vmatprep.subr.bf16.mxu1 %v3482_v5 }
  0x2d   :  { %3105 = vmatpush1.bf16.msra.mxu0 %v3481_v6  ;;  %3137 = vmatpush1.bf16.msra.mxu1 %v3484_v7 }
  0x2e   :  { %12 = vsyncpa [#allocation3], 0  ;;  %v3485_v9 = vld [vmem:[%s4381_s3 + $0x244] ss:$48 sps:$4 sm:$0xff]   ;;  %v3488_v10 = vld [vmem:[%s4381_s3 + $0x24c] ss:$48 sps:$4 sm:$0xff]   ;;  %v60_v19 = vlaneseq }
  0x2f   :  { %v3487_v11 = vld [vmem:[%s4381_s3 + $0x240] ss:$48 sps:$4 sm:$0xff]   ;;  %v3490_v12 = vld [vmem:[%s4381_s3 + $0x248] ss:$48 sps:$4 sm:$0xff]   ;;  %3107 = vmatprep.subr.bf16.mxu0 %v3485_v9  ;;  %3139 = vmatprep.subr.bf16.mxu1 %v3488_v10  ;;  %v3491_v13 = vld [vmem:[%s4381_s3 + $0x2a4] ss:$48 sps:$4 sm:$0xff]  }
  0x30   :  { %v3494_v14 = vld [vmem:[%s4381_s3 + $0x2ac] ss:$48 sps:$4 sm:$0xff]   ;;  %v3493_v15 = vld [vmem:[%s4381_s3 + $0x2a0] ss:$48 sps:$4 sm:$0xff]   ;;  %v3496_v16 = vld [vmem:[%s4381_s3 + $0x2a8] ss:$48 sps:$4 sm:$0xff]  }
  0x31   :  { %3109 = vmatpush1.bf16.msra.mxu0 %v3487_v11  ;;  %3141 = vmatpush1.bf16.msra.mxu1 %v3490_v12  ;;  %v3497_v17 = vld [vmem:[%s4381_s3 + $0x14] ss:$48 sps:$4 sm:$0xff]   ;;  %v3500_v18 = vld [vmem:[%s4381_s3 + $0x1c] ss:$48 sps:$4 sm:$0xff]   ;;  %v3895_v20 = vshrl.u32 %v60_v19, 7  ;;  %vm229_vm2 = vcmask 1041408  }
  0x32   :  { %3111 = vmatprep.subr.bf16.mxu0 %v3491_v13  ;;  %3143 = vmatprep.subr.bf16.mxu1 %v3494_v14  ;;  %v58_v24 = vld [vmem:[%s4380_s2] sm:$0x7]  ;;  %vm231_vm3 = vcmask 1043456   ;;  %v3502_v41 = vld [vmem:[%s4381_s3 + $0x18] ss:$48 sps:$4 sm:$0xff]   ;;  %vm976_vm4 = vcmask 523264  }
  0x33   :  { %v70_v21 = vsub.s32 2, %v3895_v20  ;;  %v62_v22 = vsub.s32 0, %v3895_v20  ;;  %v66_v23 = vsub.s32 1, %v3895_v20  ;;  %v3499_v40 = vld [vmem:[%s4381_s3 + $0x10] ss:$48 sps:$4 sm:$0xff]   ;;  %vm1071_vm5 = vcmask 1045504  }
  0x34   :  { %v3503_v43 = vld [vmem:[%s4381_s3 + $0x74] ss:$48 sps:$4 sm:$0xff]   ;;  %v3506_v44 = vld [vmem:[%s4381_s3 + $0x7c] ss:$48 sps:$4 sm:$0xff]   ;;  %v3505_v46 = vld [vmem:[%s4381_s3 + $0x70] ss:$48 sps:$4 sm:$0xff]  }
  0x35   :  { %3113 = vmatpush1.bf16.msra.mxu0 %v3493_v15  ;;  %3145 = vmatpush1.bf16.msra.mxu1 %v3496_v16  ;;  %v71_v25 = vrot.slane %v58_v24, %v70_v21  ;;  %v63_v26 = vrot.slane %v58_v24, %v62_v22  ;;  %v67_v27 = vrot.slane %v58_v24, %v66_v23  ;;  %v3508_v47 = vld [vmem:[%s4381_s3 + $0x78] ss:$48 sps:$4 sm:$0xff]   ;;  %v3509_v48 = vld [vmem:[%s4381_s3 + $0xd4] ss:$48 sps:$4 sm:$0xff]   ;;  %v3512_v49 = vld [vmem:[%s4381_s3 + $0xdc] ss:$48 sps:$4 sm:$0xff]  }
  0x36   :  { %3147 = vmatprep.subr.bf16.mxu0 %v3497_v17  ;;  %3179 = vmatprep.subr.bf16.mxu1 %v3500_v18  ;;  %v3511_v50 = vld [vmem:[%s4381_s3 + $0xd0] ss:$48 sps:$4 sm:$0xff]   ;;  %v3514_v51 = vld [vmem:[%s4381_s3 + $0xd8] ss:$48 sps:$4 sm:$0xff]   ;;  %v3515_v52 = vld [vmem:[%s4381_s3 + $0x134] ss:$48 sps:$4 sm:$0xff]  }
  0x37   :  { %v3518_v53 = vld [vmem:[%s4381_s3 + $0x13c] ss:$48 sps:$4 sm:$0xff]   ;;  %v3517_v54 = vld [vmem:[%s4381_s3 + $0x130] ss:$48 sps:$4 sm:$0xff]   ;;  %v3520_v55 = vld [vmem:[%s4381_s3 + $0x138] ss:$48 sps:$4 sm:$0xff]  }
  0x38   :  { %v3521_v56 = vld [vmem:[%s4381_s3 + $0x194] ss:$48 sps:$4 sm:$0xff]   ;;  %v3524_v57 = vld [vmem:[%s4381_s3 + $0x19c] ss:$48 sps:$4 sm:$0xff]   ;;  %v3523_v58 = vld [vmem:[%s4381_s3 + $0x190] ss:$48 sps:$4 sm:$0xff]  }
  0x39   :  { %v3526_v59 = vld [vmem:[%s4381_s3 + $0x198] ss:$48 sps:$4 sm:$0xff]   ;;  %v3527_v60 = vld [vmem:[%s4381_s3 + $0x1f4] ss:$48 sps:$4 sm:$0xff]   ;;  %v3530_v61 = vld [vmem:[%s4381_s3 + $0x1fc] ss:$48 sps:$4 sm:$0xff]  }
  0x3a   :  { %v3529_v62 = vld [vmem:[%s4381_s3 + $0x1f0] ss:$48 sps:$4 sm:$0xff]   ;;  %v3532_v63 = vld [vmem:[%s4381_s3 + $0x1f8] ss:$48 sps:$4 sm:$0xff]   ;;  %v3533_v0 = vld [vmem:[%s4381_s3 + $0x254] ss:$48 sps:$4 sm:$0xff]  }
  0x3b   :  { %v3536_v1 = vld [vmem:[%s4381_s3 + $0x25c] ss:$48 sps:$4 sm:$0xff]   ;;  %v3535_v2 = vld [vmem:[%s4381_s3 + $0x250] ss:$48 sps:$4 sm:$0xff]   ;;  %v3538_v3 = vld [vmem:[%s4381_s3 + $0x258] ss:$48 sps:$4 sm:$0xff]  }
  0x3c   :  { %v3539_v4 = vld [vmem:[%s4381_s3 + $0x2b4] ss:$48 sps:$4 sm:$0xff]   ;;  %v3542_v5 = vld [vmem:[%s4381_s3 + $0x2bc] ss:$48 sps:$4 sm:$0xff]   ;;  %v3541_v6 = vld [vmem:[%s4381_s3 + $0x2b0] ss:$48 sps:$4 sm:$0xff]  }
  0x3d   :  { %v3544_v7 = vld [vmem:[%s4381_s3 + $0x2b8] ss:$48 sps:$4 sm:$0xff]   ;;  %v3545_v9 = vld [vmem:[%s4381_s3 + $0x24] ss:$48 sps:$4 sm:$0xff]   ;;  %v3548_v10 = vld [vmem:[%s4381_s3 + $0x2c] ss:$48 sps:$4 sm:$0xff]  }
  0x3e   :  { %v3547_v11 = vld [vmem:[%s4381_s3 + $0x20] ss:$48 sps:$4 sm:$0xff]   ;;  %v3550_v12 = vld [vmem:[%s4381_s3 + $0x28] ss:$48 sps:$4 sm:$0xff]   ;;  %v3551_v13 = vld [vmem:[%s4381_s3 + $0x84] ss:$48 sps:$4 sm:$0xff]  }
  0x3f   :  { %v3554_v14 = vld [vmem:[%s4381_s3 + $0x8c] ss:$48 sps:$4 sm:$0xff]   ;;  %v3553_v15 = vld [vmem:[%s4381_s3 + $0x80] ss:$48 sps:$4 sm:$0xff]   ;;  %v3556_v16 = vld [vmem:[%s4381_s3 + $0x88] ss:$48 sps:$4 sm:$0xff]  }
  0x40   :  { %v3557_v17 = vld [vmem:[%s4381_s3 + $0xe4] ss:$48 sps:$4 sm:$0xff]   ;;  %v3560_v18 = vld [vmem:[%s4381_s3 + $0xec] ss:$48 sps:$4 sm:$0xff]   ;;  %v3559_v21 = vld [vmem:[%s4381_s3 + $0xe0] ss:$48 sps:$4 sm:$0xff]  }
  0x41   :  { %v3562_v22 = vld [vmem:[%s4381_s3 + $0xe8] ss:$48 sps:$4 sm:$0xff]   ;;  %v3563_v23 = vld [vmem:[%s4381_s3 + $0x144] ss:$48 sps:$4 sm:$0xff]   ;;  %v3566_v24 = vld [vmem:[%s4381_s3 + $0x14c] ss:$48 sps:$4 sm:$0xff]  }
  0x42   :  { %vm1055_vm7 = vcmask 46080   ;;  %vm1067_vm8 = vcmask 48128   ;;  %s3653_s19 = smov [#allocation2]  }
  0x43   :  { %s2629_s20 = sshll.u32 %s3653_s19, 4  ;;  %s2630_s20 = int_to_ptr.vmem [resolvable:$true] %s2629_s20 }
  0x44   :  { %p3630_p1 = scmp.lt.s32.totalorder %s2630_s20, %s2630_s20 }
  0xeb   :  { %v145_v28 = vpop.f32.mrb[0].mxu0  ;;  %v216_v29 = vpop.f32.mrb[0].mxu1 }
  0xec   :  { %v147_v30 = vpop.f32.mrb[1].mxu0  ;;  %v217_v31 = vadd.f32 %v216_v29, %v71_v25  ;;  %v2966_v32 = vpop.f32.mrb[1].mxu1  ;;  %v146_v33 = vadd.f32 %v145_v28, %v63_v26  ;;  %v3565_v25 = vld [vmem:[%s4381_s3 + $0x140] ss:$48 sps:$4 sm:$0xff]   ;;  %v3568_v26 = vld [vmem:[%s4381_s3 + $0x148] ss:$48 sps:$4 sm:$0xff]  }
  0xed   :  { %v148_v34 = vadd.f32 %v147_v30, %v67_v27  ;;  %v3569_v27 = vld [vmem:[%s4381_s3 + $0x1a4] ss:$48 sps:$4 sm:$0xff]   ;;  %v3572_v28 = vld [vmem:[%s4381_s3 + $0x1ac] ss:$48 sps:$4 sm:$0xff]   ;;  %v3571_v29 = vld [vmem:[%s4381_s3 + $0x1a0] ss:$48 sps:$4 sm:$0xff]  }
  0xee   :  { %v222_v35 = vmax.f32 %v217_v31, 0.0  ;;  %v220_v38 = vmax.f32 %v146_v33, 0.0  ;;  %v3574_v30 = vld [vmem:[%s4381_s3 + $0x1a8] ss:$48 sps:$4 sm:$0xff]   ;;  %v3575_v31 = vld [vmem:[%s4381_s3 + $0x204] ss:$48 sps:$4 sm:$0xff]  }
  0xef   :  { %v221_v36 = vmax.f32 %v148_v34, 0.0  ;;  %v3578_v32 = vld [vmem:[%s4381_s3 + $0x20c] ss:$48 sps:$4 sm:$0xff]   ;;  %v3577_v33 = vld [vmem:[%s4381_s3 + $0x200] ss:$48 sps:$4 sm:$0xff]  }
  0xf0   :  { %v227_v37 = vrot.slane %v222_v35, 4  ;;  %v3580_v34 = vld [vmem:[%s4381_s3 + $0x208] ss:$48 sps:$4 sm:$0xff]   ;;  %v3581_v35 = vld [vmem:[%s4381_s3 + $0x264] ss:$48 sps:$4 sm:$0xff]  }
  0xf1   :  { %v224_v39 = vrot.slane %v221_v36, 6  ;;  %v3584_v36 = vld [vmem:[%s4381_s3 + $0x26c] ss:$48 sps:$4 sm:$0xff]  }
  0xf3   :  { %v230_v42 = vsel %vm229_vm2, %v220_v38, %v224_v39  ;;  %v3586_v38 = vld [vmem:[%s4381_s3 + $0x268] ss:$48 sps:$4 sm:$0xff]   ;;  %v3587_v39 = vld [vmem:[%s4381_s3 + $0x2c4] ss:$48 sps:$4 sm:$0xff]  }
  0xf4   :  { %v3915_v45 = vsel %vm231_vm3, %v230_v42, %v227_v37  ;;  %v3583_v37 = vld [vmem:[%s4381_s3 + $0x260] ss:$48 sps:$4 sm:$0xff]   ;;  %v3592_v42 = vld [vmem:[%s4381_s3 + $0x2c8] ss:$48 sps:$4 sm:$0xff]  }
  0xf5   :  { %586 = vmatmul.mubr.f32.vlgmr.msra.gmra.mrb[2].mxu0 %v3915_v45  ;;  %657 = vmatmul.mubr.f32.vlgmr.msra.gmra.mrb[2].mxu1 %v3915_v45 }
  0xf6   :  { %3149 = vmatpush1.bf16.msra.mxu0 %v3499_v40  ;;  %3181 = vmatpush1.bf16.msra.mxu1 %v3502_v41  ;;  %v3590_v40 = vld [vmem:[%s4381_s3 + $0x2cc] ss:$48 sps:$4 sm:$0xff]   ;;  %v3589_v41 = vld [vmem:[%s4381_s3 + $0x2c0] ss:$48 sps:$4 sm:$0xff]   ;;  %s3652_s3 = smov 64  }
  0xf7   :  { %3151 = vmatprep.subr.bf16.mxu0 %v3503_v43  ;;  %3183 = vmatprep.subr.bf16.mxu1 %v3506_v44 }
  0xf8   :  { %727 = vmatprep.mubr.f32.mxu0 %v3650_v8  ;;  %798 = vmatprep.mubr.f32.mxu1 %v3650_v8 }
  0xfa   :  { %3153 = vmatpush1.bf16.msra.mxu0 %v3505_v46  ;;  %3185 = vmatpush1.bf16.msra.mxu1 %v3508_v47 }
  0xfb   :  { %3155 = vmatprep.subr.bf16.mxu0 %v3509_v48  ;;  %3187 = vmatprep.subr.bf16.mxu1 %v3512_v49 }
  0xfe   :  { %3157 = vmatpush1.bf16.msra.mxu0 %v3511_v50  ;;  %3189 = vmatpush1.bf16.msra.mxu1 %v3514_v51 }
  0xff   :  { %3159 = vmatprep.subr.bf16.mxu0 %v3515_v52  ;;  %3191 = vmatprep.subr.bf16.mxu1 %v3518_v53 }
 0x102   :  { %3161 = vmatpush1.bf16.msra.mxu0 %v3517_v54  ;;  %3193 = vmatpush1.bf16.msra.mxu1 %v3520_v55 }
 0x103   :  { %3163 = vmatprep.subr.bf16.mxu0 %v3521_v56  ;;  %3195 = vmatprep.subr.bf16.mxu1 %v3524_v57 }
 0x106   :  { %3165 = vmatpush1.bf16.msra.mxu0 %v3523_v58  ;;  %3197 = vmatpush1.bf16.msra.mxu1 %v3526_v59 }
 0x107   :  { %3167 = vmatprep.subr.bf16.mxu0 %v3527_v60  ;;  %3199 = vmatprep.subr.bf16.mxu1 %v3530_v61 }
 0x10a   :  { %3169 = vmatpush1.bf16.msra.mxu0 %v3529_v62  ;;  %3201 = vmatpush1.bf16.msra.mxu1 %v3532_v63  ;;  %v962_v63 = vand.u32 127, %v60_v19 }
 0x10b   :  { %3171 = vmatprep.subr.bf16.mxu0 %v3533_v0  ;;  %3203 = vmatprep.subr.bf16.mxu1 %v3536_v1  ;;  %v953_v1 = vand.u32 1, %v3895_v20 }
 0x10c   :  { %v967_v0 = vand.u32 1, %v962_v63 }
 0x10e   :  { %3173 = vmatpush1.bf16.msra.mxu0 %v3535_v2  ;;  %3205 = vmatpush1.bf16.msra.mxu1 %v3538_v3  ;;  %vm4165_vm6 = vcmp.eq.s32.totalorder %v953_v1, %v967_v0 }
 0x10f   :  { %3175 = vmatprep.subr.bf16.mxu0 %v3539_v4  ;;  %3207 = vmatprep.subr.bf16.mxu1 %v3542_v5 }
 0x112   :  { %3177 = vmatpush1.bf16.msra.mxu0 %v3541_v6  ;;  %3209 = vmatpush1.bf16.msra.mxu1 %v3544_v7 }
 0x113   :  { %3211 = vmatprep.subr.bf16.mxu0 %v3545_v9  ;;  %3243 = vmatprep.subr.bf16.mxu1 %v3548_v10 }
 0x115   :  { %728 = vmatmul.mubr.f32.vlgmr.msra.gmra.mrb[4].mxu0 %v3915_v45  ;;  %799 = vmatmul.mubr.f32.vlgmr.msra.gmra.mrb[4].mxu1 %v3915_v45 }
 0x116   :  { %3213 = vmatpush1.bf16.msra.mxu0 %v3547_v11  ;;  %3245 = vmatpush1.bf16.msra.mxu1 %v3550_v12 }
 0x117   :  { %3215 = vmatprep.subr.bf16.mxu0 %v3551_v13  ;;  %3247 = vmatprep.subr.bf16.mxu1 %v3554_v14 }
 0x118   :  { %869 = vmatprep.mubr.f32.mxu0 %v3650_v8  ;;  %940 = vmatprep.mubr.f32.mxu1 %v3650_v8 }
 0x11a   :  { %3217 = vmatpush1.bf16.msra.mxu0 %v3553_v15  ;;  %3249 = vmatpush1.bf16.msra.mxu1 %v3556_v16 }
 0x11b   :  { %3219 = vmatprep.subr.bf16.mxu0 %v3557_v17  ;;  %3251 = vmatprep.subr.bf16.mxu1 %v3560_v18 }
 0x11e   :  { %3221 = vmatpush1.bf16.msra.mxu0 %v3559_v21  ;;  %3253 = vmatpush1.bf16.msra.mxu1 %v3562_v22 }
 0x11f   :  { %3223 = vmatprep.subr.bf16.mxu0 %v3563_v23  ;;  %3255 = vmatprep.subr.bf16.mxu1 %v3566_v24 }
 0x122   :  { %3225 = vmatpush1.bf16.msra.mxu0 %v3565_v25  ;;  %3257 = vmatpush1.bf16.msra.mxu1 %v3568_v26 }
 0x123   :  { %3227 = vmatprep.subr.bf16.mxu0 %v3569_v27  ;;  %3259 = vmatprep.subr.bf16.mxu1 %v3572_v28 }
 0x126   :  { %3229 = vmatpush1.bf16.msra.mxu0 %v3571_v29  ;;  %3261 = vmatpush1.bf16.msra.mxu1 %v3574_v30 }
 0x127   :  { %3231 = vmatprep.subr.bf16.mxu0 %v3575_v31  ;;  %3263 = vmatprep.subr.bf16.mxu1 %v3578_v32 }
 0x12a   :  { %3233 = vmatpush1.bf16.msra.mxu0 %v3577_v33  ;;  %3265 = vmatpush1.bf16.msra.mxu1 %v3580_v34 }
 0x12b   :  { %3235 = vmatprep.subr.bf16.mxu0 %v3581_v35  ;;  %3267 = vmatprep.subr.bf16.mxu1 %v3584_v36 }
 0x12e   :  { %3237 = vmatpush1.bf16.msra.mxu0 %v3583_v37  ;;  %3269 = vmatpush1.bf16.msra.mxu1 %v3586_v38 }
 0x12f   :  { %3239 = vmatprep.subr.bf16.mxu0 %v3587_v39  ;;  %3271 = vmatprep.subr.bf16.mxu1 %v3590_v40 }
 0x132   :  { %3241 = vmatpush1.bf16.msra.mxu0 %v3589_v41  ;;  %3273 = vmatpush1.bf16.msra.mxu1 %v3592_v42 }
 0x133   :  { %2967 = vmatprep.subr.mxu0 %v3650_v8  ;;  %2972 = vmatprep.subr.mxu1 %v3650_v8 }
 0x135   :  { %870 = vmatmul.mubr.f32.vlgmr.msra.gmra.mrb[6].mxu0 %v3915_v45  ;;  %941 = vmatmul.mubr.f32.vlgmr.msra.gmra.mrb[6].mxu1 %v3915_v45 }
 0x136   :  { %2969 = vmatprep.mubr.msk.f32.mxu0 %vm3651_vm0, %v3650_v8  ;;  %2974 = vmatprep.mubr.msk.f32.mxu1 %vm3651_vm0, %v3650_v8 }
 0x1c8   :  { %v587_v43 = vpop.f32.mrb[2].mxu0  ;;  %v658_v44 = vpop.f32.mrb[2].mxu1 }
 0x1c9   :  { %v589_v46 = vpop.f32.mrb[3].mxu0  ;;  %v660_v47 = vpop.f32.mrb[3].mxu1 }
 0x1e8   :  { %v729_v48 = vpop.f32.mrb[4].mxu0  ;;  %v800_v49 = vpop.f32.mrb[4].mxu1 }
 0x1e9   :  { %v802_v50 = vpop.f32.mrb[5].mxu1  ;;  %1147 = vrot.lane.b32.xlu0 %v729_v48, %s3652_s3  ;;  %v731_v51 = vpop.f32.mrb[5].mxu0  ;;  %2968 = vmatpush3.xpose.msk.msra.mxu0 %vm976_vm4, %v729_v48 }
 0x1ea   :  { %1480 = vrot.lane.b32.xlu1 %v731_v51, %s3652_s3  ;;  %2977 = vmatprep.subr.mxu0 %v3650_v8 }
 0x1ec   :  { %2970 = vmatmul.mubr.msk.f32.vlgmr.msra.gmra.mrb[8].mxu0 %vm976_vm4, %v587_v43 }
 0x1ed   :  { %1145 = vrot.lane.b32.xlu0 %v587_v43, %s3652_s3  ;;  %2979 = vmatprep.mubr.msk.f32.mxu0 %vm3651_vm0, %v3650_v8 }
 0x1ee   :  { %1478 = vrot.lane.b32.xlu1 %v589_v46, %s3652_s3 }
 0x1f1   :  { %1813 = vrot.lane.b32.xlu0 %v800_v49, %s3652_s3 }
 0x1f2   :  { %1811 = vrot.lane.b32.xlu1 %v658_v44, %s3652_s3 }
 0x1f5   :  { %2146 = vrot.lane.b32.xlu0 %v802_v50, %s3652_s3 }
 0x1f6   :  { %2144 = vrot.lane.b32.xlu1 %v660_v47, %s3652_s3 }
 0x208   :  { %v4120_v45 = vpop.f32.mrb[6].mxu0  ;;  %v4122_v52 = vpop.f32.mrb[6].mxu1 }
 0x209   :  { %v4124_v53 = vpop.f32.mrb[7].mxu0  ;;  %v4126_v54 = vpop.f32.mrb[7].mxu1  ;;  %2973 = vmatpush3.msk.msra.mxu1 %vm1071_vm5, %v4120_v45 }
 0x20a   :  { %2982 = vmatprep.subr.mxu1 %v3650_v8 }
 0x25b   :  { %v1148_v55 = vpop.permute.xlu0 %1147 }
 0x25c   :  { %2978 = vmatpush3.xpose.msk.msra.mxu0 %vm976_vm4, %v1148_v55  ;;  %v1481_v57 = vpop.permute.xlu1 %1480 }
 0x25d   :  { %2987 = vmatprep.subr.mxu0 %v3650_v8 }
 0x25f   :  { %v1146_v56 = vpop.permute.xlu0 %1145 }
 0x260   :  { %2980 = vmatmul.mubr.msk.f32.vlgmr.msra.gmra.mrb[10].mxu0 %vm976_vm4, %v1146_v56  ;;  %v1479_v58 = vpop.permute.xlu1 %1478 }
 0x261   :  { %2988 = vmatpush3.xpose.msk.msra.mxu0 %vm976_vm4, %v731_v51  ;;  %2989 = vmatprep.mubr.msk.f32.mxu0 %vm3651_vm0, %v3650_v8 }
 0x262   :  { %2997 = vmatprep.subr.mxu0 %v3650_v8 }
 0x263   :  { %v1814_v59 = vpop.permute.xlu0 %1813 }
 0x264   :  { %2990 = vmatmul.mubr.msk.f32.vlgmr.msra.gmra.mrb[12].mxu0 %vm976_vm4, %v589_v46  ;;  %v1812_v60 = vpop.permute.xlu1 %1811 }
 0x265   :  { %2998 = vmatpush3.xpose.msk.msra.mxu0 %vm976_vm4, %v1481_v57  ;;  %2999 = vmatprep.mubr.msk.f32.mxu0 %vm3651_vm0, %v3650_v8 }
 0x266   :  { %3007 = vmatprep.subr.mxu0 %v3650_v8 }
 0x267   :  { %v2147_v61 = vpop.permute.xlu0 %2146 }
 0x268   :  { %3000 = vmatmul.mubr.msk.f32.vlgmr.msra.gmra.mrb[14].mxu0 %vm976_vm4, %v1479_v58  ;;  %v2145_v62 = vpop.permute.xlu1 %2144 }
 0x269   :  { %3008 = vmatpush3.xpose.msk.msra.mxu0 %vm976_vm4, %v800_v49  ;;  %3009 = vmatprep.mubr.msk.f32.mxu0 %vm3651_vm0, %v3650_v8 }
 0x26a   :  { %3017 = vmatprep.subr.mxu0 %v3650_v8 }
 0x26c   :  { %3010 = vmatmul.mubr.msk.f32.vlgmr.msra.gmra.mrb[16].mxu0 %vm976_vm4, %v658_v44 }
 0x26d   :  { %3018 = vmatpush3.xpose.msk.msra.mxu0 %vm976_vm4, %v1814_v59  ;;  %3019 = vmatprep.mubr.msk.f32.mxu0 %vm3651_vm0, %v3650_v8 }
 0x26e   :  { %3027 = vmatprep.subr.mxu0 %v3650_v8 }
 0x270   :  { %3020 = vmatmul.mubr.msk.f32.vlgmr.msra.gmra.mrb[18].mxu0 %vm976_vm4, %v1812_v60 }
 0x271   :  { %3028 = vmatpush3.xpose.msk.msra.mxu0 %vm976_vm4, %v802_v50  ;;  %3029 = vmatprep.mubr.msk.f32.mxu0 %vm3651_vm0, %v3650_v8 }
 0x272   :  { %3037 = vmatprep.subr.mxu0 %v3650_v8 }
 0x274   :  { %3030 = vmatmul.mubr.msk.f32.vlgmr.msra.gmra.mrb[20].mxu0 %vm976_vm4, %v660_v47 }
 0x275   :  { %3038 = vmatpush3.xpose.msk.msra.mxu0 %vm976_vm4, %v2147_v61  ;;  %3039 = vmatprep.mubr.msk.f32.mxu0 %vm3651_vm0, %v3650_v8 }
 0x278   :  { %3040 = vmatmul.mubr.msk.f32.vlgmr.msra.gmra.mrb[22].mxu0 %vm976_vm4, %v2145_v62 }
 0x2bf   :  { %v1049_v2 = vpop.f32.mrb[8].mxu0 }
 0x2c0   :  { %v1053_v4 = vmul.f32 0.125, %v1049_v2  ;;  %v2971_v5 = vpop.f32.mrb[9].mxu0 }
 0x2c2   :  { %v1054_v6 = vsel %vm4165_vm6, %v1053_v4, -1e+30 }
 0x2c3   :  { %v1056_v7 = vsel %vm1055_vm7, %v1054_v6, -inf }
 0x2c4   :  { %1057 = vmax.xlane.f32.xlu0 %v1056_v7 }
 0x333   :  { %v1219_v9 = vpop.f32.mrb[10].mxu0 }
 0x334   :  { %v1223_v10 = vmul.f32 0.125, %v1219_v9  ;;  %v2981_v19 = vpop.f32.mrb[11].mxu0 }
 0x336   :  { %v1224_v20 = vsel %vm4165_vm6, %v1223_v10, -1e+30 }
 0x337   :  { %v1385_v11 = vpop.f32.mrb[12].mxu0  ;;  %v1225_v12 = vsel %vm1055_vm7, %v1224_v20, -inf }
 0x338   :  { %v1389_v13 = vmul.f32 0.125, %v1385_v11  ;;  %1226 = vmax.xlane.f32.xlu1 %v1225_v12  ;;  %v2991_v14 = vpop.f32.mrb[13].mxu0 }
 0x33a   :  { %v1390_v15 = vsel %vm4165_vm6, %v1389_v13, -1e+30 }
 0x33b   :  { %v1552_v16 = vpop.f32.mrb[14].mxu0  ;;  %v1391_v17 = vsel %vm1055_vm7, %v1390_v15, -inf }
 0x33c   :  { %v1556_v18 = vmul.f32 0.125, %v1552_v16  ;;  %1392 = vmax.xlane.f32.xlu0 %v1391_v17  ;;  %v3001_v21 = vpop.f32.mrb[15].mxu0 }
 0x33e   :  { %v1557_v22 = vsel %vm4165_vm6, %v1556_v18, -1e+30 }
 0x33f   :  { %v1718_v23 = vpop.f32.mrb[16].mxu0  ;;  %v1558_v24 = vsel %vm1055_vm7, %v1557_v22, -inf }
 0x340   :  { %v1722_v25 = vmul.f32 0.125, %v1718_v23  ;;  %1559 = vmax.xlane.f32.xlu0 %v1558_v24  ;;  %v3011_v26 = vpop.f32.mrb[17].mxu0 }
 0x342   :  { %v1723_v27 = vsel %vm4165_vm6, %v1722_v25, -1e+30 }
 0x343   :  { %v1885_v28 = vpop.f32.mrb[18].mxu0  ;;  %v1724_v29 = vsel %vm1055_vm7, %v1723_v27, -inf }
 0x344   :  { %v1889_v30 = vmul.f32 0.125, %v1885_v28  ;;  %1725 = vmax.xlane.f32.xlu1 %v1724_v29  ;;  %v3021_v31 = vpop.f32.mrb[19].mxu0 }
 0x346   :  { %v1890_v32 = vsel %vm4165_vm6, %v1889_v30, -1e+30 }
 0x347   :  { %v2051_v33 = vpop.f32.mrb[20].mxu0  ;;  %v1891_v34 = vsel %vm1055_vm7, %v1890_v32, -inf }
 0x348   :  { %v2055_v35 = vmul.f32 0.125, %v2051_v33  ;;  %1892 = vmax.xlane.f32.xlu0 %v1891_v34  ;;  %v3031_v36 = vpop.f32.mrb[21].mxu0 }
 0x34a   :  { %v2056_v37 = vsel %vm4165_vm6, %v2055_v35, -1e+30 }
 0x34b   :  { %v2218_v38 = vpop.f32.mrb[22].mxu0  ;;  %v2057_v39 = vsel %vm1055_vm7, %v2056_v37, -inf }
 0x34c   :  { %v2222_v40 = vmul.f32 0.125, %v2218_v38  ;;  %2058 = vmax.xlane.f32.xlu1 %v2057_v39  ;;  %v3041_v41 = vpop.f32.mrb[23].mxu0 }
 0x34e   :  { %v2223_v42 = vsel %vm4165_vm6, %v2222_v40, -1e+30 }
 0x34f   :  { %v2224_v43 = vsel %vm1055_vm7, %v2223_v42, -inf }
 0x350   :  { %2225 = vmax.xlane.f32.xlu0 %v2224_v43 }
 0x351   :  { %v1058_v44 = vpop.xlane.xlu0 %1057 }
 0x352   :  { %v1059_v46 = vsub.f32 %v1054_v6, %v1058_v44 }
 0x354   :  { %v1060_v47 = vmul.f32 1.442695, %v1059_v46 }
 0x356   :  { %3593 = vpow2.f32 %v1060_v47 }
 0x35d   :  { %1236 = vrot.lane.b32.xlu1 %v4120_v45, %s3652_s3 }
 0x360   :  { %v3594_v48 = vpop.eup %3593 }
 0x361   :  { %v1062_v49 = vsel %vm1055_vm7, %v3594_v48, 0.0 }
 0x381   :  { %1063 = vadd.xlane.f32.xlu1 %v1062_v49 }
 0x3c5   :  { %v1227_v50 = vpop.xlane.xlu1 %1226 }
 0x3c6   :  { %v1228_v51 = vsub.f32 %v1224_v20, %v1227_v50 }
 0x3c8   :  { %v1229_v55 = vmul.f32 1.442695, %v1228_v51  ;;  %v2673_v51 = vld [vmem:[%s4382_s4] sm:$0xff]  }
 0x3c9   :  { %v1393_v56 = vpop.xlane.xlu0 %1392 }
 0x3ca   :  { %3595 = vpow2.f32 %v1229_v55  ;;  %v1394_v57 = vsub.f32 %v1390_v15, %v1393_v56  ;;  %v2808_v55 = vld [vmem:[%s4382_s4 + $0x48] sm:$0xff]   ;;  %v2823_v56 = vld [vmem:[%s4382_s4 + $0xc0] sm:$0xff]  }
 0x3cc   :  { %v1395_v58 = vmul.f32 1.442695, %v1394_v57  ;;  %v2815_v57 = vld [vmem:[%s4382_s4 + $0x80] sm:$0xff]  }
 0x3cd   :  { %v1560_v59 = vpop.xlane.xlu0 %1559 }
 0x3ce   :  { %3597 = vpow2.f32 %v1395_v58  ;;  %v1561_v60 = vsub.f32 %v1557_v22, %v1560_v59  ;;  %v2809_v58 = vld [vmem:[%s4382_s4 + $0x50] sm:$0xff]   ;;  %v2824_v59 = vld [vmem:[%s4382_s4 + $0xc8] sm:$0xff]  }
 0x3d0   :  { %v1562_v61 = vmul.f32 1.442695, %v1561_v60  ;;  %v2816_v60 = vld [vmem:[%s4382_s4 + $0x88] sm:$0xff]  }
 0x3d1   :  { %v1726_v45 = vpop.xlane.xlu1 %1725 }
 0x3d2   :  { %3599 = vpow2.f32 %v1562_v61  ;;  %v1727_v62 = vsub.f32 %v1723_v27, %v1726_v45  ;;  %v2801_v61 = vld [vmem:[%s4382_s4 + $0x10] sm:$0xff]  }
 0x3d3   :  { %v2825_v45 = vld [vmem:[%s4382_s4 + $0xd0] sm:$0xff]  }
 0x3d4   :  { %v3596_v63 = vpop.eup %3595  ;;  %v1728_v0 = vmul.f32 1.442695, %v1727_v62 }
 0x3d5   :  { %v1893_v1 = vpop.xlane.xlu0 %1892  ;;  %v1231_v2 = vsel %vm1055_vm7, %v3596_v63, 0.0 }
 0x3d6   :  { %3601 = vpow2.f32 %v1728_v0  ;;  %v1894_v3 = vsub.f32 %v1890_v32, %v1893_v1  ;;  %1232 = vadd.xlane.f32.xlu0 %v1231_v2  ;;  %v2817_v1 = vld [vmem:[%s4382_s4 + $0x90] sm:$0xff]   ;;  %v2802_v2 = vld [vmem:[%s4382_s4 + $0x18] sm:$0xff]  }
 0x3d8   :  { %v3598_v4 = vpop.eup %3597  ;;  %v1895_v5 = vmul.f32 1.442695, %v1894_v3  ;;  %v2811_v3 = vld [vmem:[%s4382_s4 + $0x60] sm:$0xff]  }
 0x3d9   :  { %v2059_v6 = vpop.xlane.xlu1 %2058  ;;  %v1397_v7 = vsel %vm1055_vm7, %v3598_v4, 0.0 }
 0x3da   :  { %3603 = vpow2.f32 %v1895_v5  ;;  %v2060_v9 = vsub.f32 %v2056_v37, %v2059_v6  ;;  %1398 = vadd.xlane.f32.xlu1 %v1397_v7  ;;  %v2812_v5 = vld [vmem:[%s4382_s4 + $0x68] sm:$0xff]   ;;  %v2813_v7 = vld [vmem:[%s4382_s4 + $0x70] sm:$0xff]  }
 0x3db   :  { %v2804_v6 = vld [vmem:[%s4382_s4 + $0x28] sm:$0xff]  }
 0x3dc   :  { %v3600_v10 = vpop.eup %3599  ;;  %v2061_v19 = vmul.f32 1.442695, %v2060_v9  ;;  %v2805_v9 = vld [vmem:[%s4382_s4 + $0x30] sm:$0xff]  }
 0x3dd   :  { %v2226_v20 = vpop.xlane.xlu0 %2225  ;;  %v1564_v11 = vsel %vm1055_vm7, %v3600_v10, 0.0  ;;  %v1237_v24 = vpop.permute.xlu1 %1236 }
 0x3de   :  { %3605 = vpow2.f32 %v2061_v19  ;;  %v2227_v12 = vsub.f32 %v2223_v42, %v2226_v20  ;;  %1565 = vadd.xlane.f32.xlu0 %v1564_v11 }
 0x3e0   :  { %v3602_v13 = vpop.eup %3601  ;;  %v2228_v14 = vmul.f32 1.442695, %v2227_v12  ;;  %v2814_v12 = vld [vmem:[%s4382_s4 + $0x78] sm:$0xff]  }
 0x3e1   :  { %v1730_v15 = vsel %vm1055_vm7, %v3602_v13, 0.0 }
 0x3e2   :  { %3607 = vpow2.f32 %v2228_v14  ;;  %1731 = vadd.xlane.f32.xlu1 %v1730_v15  ;;  %v2806_v14 = vld [vmem:[%s4382_s4 + $0x38] sm:$0xff]  }
 0x3e3   :  { %v2818_v15 = vld [vmem:[%s4382_s4 + $0x98] sm:$0xff]  }
 0x3e4   :  { %v3604_v16 = vpop.eup %3603 }
 0x3e5   :  { %v1897_v17 = vsel %vm1055_vm7, %v3604_v16, 0.0 }
 0x3e6   :  { %1898 = vadd.xlane.f32.xlu0 %v1897_v17  ;;  %v2819_v17 = vld [vmem:[%s4382_s4 + $0xa0] sm:$0xff]  }
 0x3e8   :  { %v4201_v18 = vpop.eup %3605 }
 0x3e9   :  { %v2063_v21 = vsel %vm1055_vm7, %v4201_v18, 0.0 }
 0x3ea   :  { %2064 = vadd.xlane.f32.xlu1 %v2063_v21  ;;  %v2820_v21 = vld [vmem:[%s4382_s4 + $0xa8] sm:$0xff]  }
 0x3ec   :  { %v4205_v22 = vpop.eup %3607 }
 0x3ed   :  { %v2230_v23 = vsel %vm1055_vm7, %v4205_v22, 0.0 }
 0x3ee   :  { %2231 = vadd.xlane.f32.xlu0 %v2230_v23 }
 0x3fb   :  { %1902 = vrot.lane.b32.xlu1 %v4122_v52, %s3652_s3 }
 0x3ff   :  { %2235 = vrot.lane.b32.xlu1 %v4126_v54, %s3652_s3 }
 0x404   :  { %1569 = vrot.lane.b32.xlu0 %v4124_v53, %s3652_s3 }
 0x40e   :  { %v1064_v25 = vpop.xlane.xlu1 %1063 }
 0x40f   :  { %3609 = vrcp.f32 %v1064_v25 }
 0x419   :  { %v3610_v26 = vpop.eup %3609 }
 0x41a   :  { %v1066_v27 = vmul.f32 %v3610_v26, %v3594_v48  ;;  %v2821_v26 = vld [vmem:[%s4382_s4 + $0xb0] sm:$0xff]  }
 0x41c   :  { %2975 = vmatmul.mubr.msk.f32.vlgmr.msra.gmra.mrb[8].mxu1 %vm1067_vm8, %v1066_v27 }
 0x41d   :  { %2983 = vmatpush3.msk.msra.mxu1 %vm1071_vm5, %v1237_v24  ;;  %2984 = vmatprep.mubr.msk.f32.mxu1 %vm3651_vm0, %v3650_v8 }
 0x41e   :  { %2992 = vmatprep.subr.mxu1 %v3650_v8 }
 0x463   :  { %v1233_v28 = vpop.xlane.xlu0 %1232 }
 0x464   :  { %3611 = vrcp.f32 %v1233_v28 }
 0x467   :  { %v1399_v29 = vpop.xlane.xlu1 %1398 }
 0x468   :  { %3613 = vrcp.f32 %v1399_v29  ;;  %v2830_v29 = vld [vmem:[%s4382_s4 + $0xf8] sm:$0xff]  }
 0x46b   :  { %v1566_v32 = vpop.xlane.xlu0 %1565 }
 0x46c   :  { %3615 = vrcp.f32 %v1566_v32 }
 0x46e   :  { %v3612_v30 = vpop.eup %3611 }
 0x46f   :  { %v1235_v31 = vmul.f32 %v3612_v30, %v3596_v63  ;;  %v1732_v35 = vpop.xlane.xlu1 %1731  ;;  %v2810_v63 = vld [vmem:[%s4382_s4 + $0x58] sm:$0xff]  }
 0x470   :  { %3617 = vrcp.f32 %v1732_v35  ;;  %v2822_v30 = vld [vmem:[%s4382_s4 + $0xb8] sm:$0xff]  }
 0x471   :  { %2985 = vmatmul.mubr.msk.f32.vlgmr.msra.gmra.mrb[10].mxu1 %vm1067_vm8, %v1235_v31 }
 0x472   :  { %v3614_v33 = vpop.eup %3613  ;;  %2993 = vmatpush3.msk.msra.mxu1 %vm1071_vm5, %v4124_v53  ;;  %2994 = vmatprep.mubr.msk.f32.mxu1 %vm3651_vm0, %v3650_v8 }
 0x473   :  { %v1401_v34 = vmul.f32 %v3614_v33, %v3598_v4  ;;  %3002 = vmatprep.subr.mxu1 %v3650_v8  ;;  %v1899_v36 = vpop.xlane.xlu0 %1898  ;;  %v2803_v4 = vld [vmem:[%s4382_s4 + $0x20] sm:$0xff]  }
 0x474   :  { %3619 = vrcp.f32 %v1899_v36 }
 0x475   :  { %2995 = vmatmul.mubr.msk.f32.vlgmr.msra.gmra.mrb[12].mxu1 %vm1067_vm8, %v1401_v34 }
 0x476   :  { %3004 = vmatprep.mubr.msk.f32.mxu1 %vm3651_vm0, %v3650_v8  ;;  %v3616_v39 = vpop.eup %3615 }
 0x477   :  { %v2065_v37 = vpop.xlane.xlu1 %2064  ;;  %v1568_v53 = vmul.f32 %v3616_v39, %v3600_v10 }
 0x478   :  { %3621 = vrcp.f32 %v2065_v37 }
 0x47a   :  { %v3618_v41 = vpop.eup %3617 }
 0x47b   :  { %v2232_v38 = vpop.xlane.xlu0 %2231  ;;  %v1734_v42 = vmul.f32 %v3618_v41, %v3602_v13  ;;  %v1903_v44 = vpop.permute.xlu1 %1902  ;;  %v2826_v13 = vld [vmem:[%s4382_s4 + $0xd8] sm:$0xff]  }
 0x47c   :  { %3623 = vrcp.f32 %v2232_v38 }
 0x47e   :  { %v3620_v43 = vpop.eup %3619 }
 0x47f   :  { %v1570_v40 = vpop.permute.xlu0 %1569  ;;  %v1901_v46 = vmul.f32 %v3620_v43, %v3604_v16  ;;  %v2236_v49 = vpop.permute.xlu1 %2235  ;;  %v2827_v16 = vld [vmem:[%s4382_s4 + $0xe0] sm:$0xff]  }
 0x480   :  { %3003 = vmatpush3.msk.msra.mxu1 %vm1071_vm5, %v1570_v40 }
 0x481   :  { %3005 = vmatmul.mubr.msk.f32.vlgmr.msra.gmra.mrb[14].mxu1 %vm1067_vm8, %v1568_v53  ;;  %3012 = vmatprep.subr.mxu1 %v3650_v8 }
 0x482   :  { %3013 = vmatpush3.msk.msra.mxu1 %vm1071_vm5, %v4122_v52  ;;  %3014 = vmatprep.mubr.msk.f32.mxu1 %vm3651_vm0, %v3650_v8  ;;  %v3622_v47 = vpop.eup %3621 }
 0x483   :  { %3022 = vmatprep.subr.mxu1 %v3650_v8  ;;  %v2067_v52 = vmul.f32 %v3622_v47, %v4201_v18  ;;  %v2828_v18 = vld [vmem:[%s4382_s4 + $0xe8] sm:$0xff]  }
 0x485   :  { %3015 = vmatmul.mubr.msk.f32.vlgmr.msra.gmra.mrb[16].mxu1 %vm1067_vm8, %v1734_v42 }
 0x486   :  { %3023 = vmatpush3.msk.msra.mxu1 %vm1071_vm5, %v1903_v44  ;;  %3024 = vmatprep.mubr.msk.f32.mxu1 %vm3651_vm0, %v3650_v8  ;;  %v3624_v48 = vpop.eup %3623 }
 0x487   :  { %3032 = vmatprep.subr.mxu1 %v3650_v8  ;;  %v2234_v50 = vmul.f32 %v3624_v48, %v4205_v22  ;;  %v2829_v22 = vld [vmem:[%s4382_s4 + $0xf0] sm:$0xff]  }
 0x489   :  { %3025 = vmatmul.mubr.msk.f32.vlgmr.msra.gmra.mrb[18].mxu1 %vm1067_vm8, %v1901_v46 }
 0x48a   :  { %3033 = vmatpush3.msk.msra.mxu1 %vm1071_vm5, %v4126_v54  ;;  %3034 = vmatprep.mubr.msk.f32.mxu1 %vm3651_vm0, %v3650_v8  ;;  %v2807_v54 = vld [vmem:[%s4382_s4 + $0x40] sm:$0xff]  }
 0x48b   :  { %3042 = vmatprep.subr.mxu1 %v3650_v8  ;;  %3275 = vmatprep.subr.bf16.mxu0 %v2807_v54 }
 0x48c   :  { %3277 = vmatpush3.bf16.msra.mxu0 %v2673_v51 }
 0x48d   :  { %3035 = vmatmul.mubr.msk.f32.vlgmr.msra.gmra.mrb[20].mxu1 %vm1067_vm8, %v2067_v52  ;;  %3279 = vmatprep.subr.bf16.mxu0 %v2808_v55 }
 0x48e   :  { %3043 = vmatpush3.msk.msra.mxu1 %vm1071_vm5, %v2236_v49  ;;  %3044 = vmatprep.mubr.msk.f32.mxu1 %vm3651_vm0, %v3650_v8  ;;  %v2800_v8 = vld [vmem:[%s4382_s4 + $0x8] sm:$0xff]  }
 0x48f   :  { %3307 = vmatprep.subr.bf16.mxu1 %v2823_v56  ;;  %v2607_v56 = vld [vmem:[%s4384_s6] sm:$0x3] }
 0x490   :  { %3281 = vmatpush3.bf16.msra.mxu0 %v2800_v8  ;;  %vm2608_vm9 = vcmp.eq.s32.totalorder %v2607_v56, 0  ;;  %vm2611_vm10 = vcmp.eq.s32.totalorder %v2607_v56, 1  ;;  %vm2617_vm11 = vcmp.eq.s32.totalorder %v2607_v56, 2 }
 0x491   :  { %3045 = vmatmul.mubr.msk.f32.vlgmr.msra.gmra.mrb[22].mxu1 %vm1067_vm8, %v2234_v50  ;;  %3283 = vmatprep.subr.bf16.mxu0 %v2809_v58  ;;  %v2671_v50 = vld [vmem:[%s4383_s5] ss:$0 sm:$0xff]  ;;  %s3625_s5 = scalar_lea.vmem %s2630_s20, 32 }
 0x492   :  { %3309 = vmatpush3.bf16.msra.mxu1 %v2815_v57  ;;  %p3626_p0 = scmp.ne.s32.totalorder %s2630_s20, %s3625_s5  ;;  %p3631_p2 = scmp.lt.s32.totalorder %s3625_s5, %s3625_s5 }
 0x493   :  { %3311 = vmatprep.subr.bf16.mxu1 %v2824_v59 }
 0x494   :  { %3285 = vmatpush3.bf16.msra.mxu0 %v2801_v61  ;;  %p3632_p3 = por %p3631_p2, %p3630_p1 }
 0x495   :  { %3287 = vmatprep.subr.bf16.mxu0 %v2810_v63 }
 0x496   :  { %3313 = vmatpush3.bf16.msra.mxu1 %v2816_v60  ;;  %p3633_p4 = pnand %p3632_p3, %p3626_p0 }
 0x497   :  { %3315 = vmatprep.subr.bf16.mxu1 %v2825_v45 }
 0x498   :  { %3289 = vmatpush3.bf16.msra.mxu0 %v2802_v2 }
 0x499   :  { %3291 = vmatprep.subr.bf16.mxu0 %v2811_v3 }
 0x49a   :  { %3317 = vmatpush3.bf16.msra.mxu1 %v2817_v1 }
 0x49b   :  { %3319 = vmatprep.subr.bf16.mxu1 %v2826_v13 }
 0x49c   :  { %3293 = vmatpush3.bf16.msra.mxu0 %v2803_v4 }
 0x49d   :  { %3295 = vmatprep.subr.bf16.mxu0 %v2812_v5 }
 0x49e   :  { %3321 = vmatpush3.bf16.msra.mxu1 %v2818_v15 }
 0x49f   :  { %3323 = vmatprep.subr.bf16.mxu1 %v2827_v16 }
 0x4a0   :  { %3297 = vmatpush3.bf16.msra.mxu0 %v2804_v6 }
 0x4a1   :  { %3299 = vmatprep.subr.bf16.mxu0 %v2813_v7 }
 0x4a2   :  { %3325 = vmatpush3.bf16.msra.mxu1 %v2819_v17 }
 0x4a3   :  { %3327 = vmatprep.subr.bf16.mxu1 %v2828_v18 }
 0x4a4   :  { %3301 = vmatpush3.bf16.msra.mxu0 %v2805_v9 }
 0x4a5   :  { %3303 = vmatprep.subr.bf16.mxu0 %v2814_v12 }
 0x4a6   :  { %3329 = vmatpush3.bf16.msra.mxu1 %v2820_v21 }
 0x4a7   :  { %3331 = vmatprep.subr.bf16.mxu1 %v2829_v22 }
 0x4a8   :  { %3305 = vmatpush3.bf16.msra.mxu0 %v2806_v14 }
 0x4aa   :  { %3333 = vmatpush3.bf16.msra.mxu1 %v2821_v26 }
 0x4ab   :  { %3335 = vmatprep.subr.bf16.mxu1 %v2830_v29 }
 0x4ae   :  { %3337 = vmatpush3.bf16.msra.mxu1 %v2822_v30 }
 0x4ef   :  { %v4288_v62 = vpop.f32.mrb[8].mxu1 }
 0x4f0   :  { %v2976_v0 = vpop.f32.mrb[9].mxu1 }
 0x544   :  { %v1309_v10 = vpop.f32.mrb[10].mxu1 }
 0x545   :  { %v2986_v19 = vpop.f32.mrb[11].mxu1 }
 0x548   :  { %v1474_v20 = vpop.f32.mrb[12].mxu1 }
 0x549   :  { %v2996_v11 = vpop.f32.mrb[13].mxu1 }
 0x554   :  { %v1642_v23 = vpop.f32.mrb[14].mxu1 }
 0x555   :  { %v3439_v24 = vpack.i.bf16 %v1309_v10, %v1642_v23  ;;  %v3006_v25 = vpop.f32.mrb[15].mxu1 }
 0x557   :  { %3440 = vrot.lane.b32.xlu0 %v3439_v24, %s3652_s3 }
 0x558   :  { %v1807_v27 = vpop.f32.mrb[16].mxu1 }
 0x559   :  { %v3016_v28 = vpop.f32.mrb[17].mxu1 }
 0x55c   :  { %v1975_v31 = vpop.f32.mrb[18].mxu1 }
 0x55d   :  { %v3026_v32 = vpop.f32.mrb[19].mxu1 }
 0x560   :  { %v2140_v33 = vpop.f32.mrb[20].mxu1 }
 0x561   :  { %v3036_v34 = vpop.f32.mrb[21].mxu1 }
 0x564   :  { %v2308_v35 = vpop.f32.mrb[22].mxu1 }
 0x565   :  { %v3444_v36 = vpack.i.bf16 %v1975_v31, %v2308_v35  ;;  %v3046_v37 = vpop.f32.mrb[23].mxu1 }
 0x567   :  { %3445 = vrot.lane.b32.xlu1 %v3444_v36, %s3652_s3 }
 0x5c9   :  { %v3441_v38 = vpop.permute.xlu0 %3440 }
 0x5ca   :  { %v3443_v39 = vunpack.i.h.bf16 %v3441_v38  ;;  %v3442_v53 = vunpack.i.l.bf16 %v3441_v38 }
 0x5cc   :  { %v2329_v40 = vsel %vm976_vm4, %v1474_v20, %v3442_v53  ;;  %v2328_v41 = vsel %vm976_vm4, %v4288_v62, %v3443_v39 }
 0x5cd   :  { %2531 = vmatprep.mubr.f32.mxu0 %v2329_v40 }
 0x5ce   :  { %2532 = vmatmul.mubr.f32.vlgmr.msra.gmra.mrb[24].mxu0 %v2328_v41 }
 0x5d9   :  { %v3446_v42 = vpop.permute.xlu1 %3445 }
 0x5da   :  { %v3448_v43 = vunpack.i.h.bf16 %v3446_v42  ;;  %v3447_v44 = vunpack.i.l.bf16 %v3446_v42 }
 0x5dc   :  { %v2331_v46 = vsel %vm976_vm4, %v2140_v33, %v3447_v44  ;;  %v2330_v47 = vsel %vm976_vm4, %v1807_v27, %v3448_v43 }
 0x5dd   :  { %2601 = vmatprep.mubr.f32.mxu1 %v2331_v46 }
 0x5de   :  { %2602 = vmatmul.mubr.f32.vlgmr.msra.gmra.mrb[24].mxu1 %v2330_v47 }
 0x6a1   :  { %v2906_v52 = vpop.f32.mrb[24].mxu0 }
 0x6a2   :  { %v2907_v48 = vpop.f32.mrb[25].mxu0 }
 0x6a3   :  { %v2908_v49 = vadd.f32 %v2907_v48, %v2906_v52 }
 0x6a5   :  { %v2534_v55 = vadd.f32 %v2908_v49, %v2671_v50 }
 0x6b1   :  { %v2941_v54 = vpop.f32.mrb[24].mxu1 }
 0x6b2   :  { %v2942_v51 = vpop.f32.mrb[25].mxu1 }
 0x6b3   :  { %v2943_v8 = vadd.f32 %v2942_v51, %v2941_v54 }
 0x6b5   :  { %v2604_v57 = vadd.f32 %v2943_v8, %v2534_v55 }
 0x6b7   :  { %v2613_v58 = vrot.slane %v2604_v57, 2  ;;  %v2618_v59 = vrot.slane %v2604_v57, 4  ;;  %v2609_v60 = vsel %vm2608_vm9, %v2604_v57, 0.0 }
 0x6b9   :  { %v2615_v61 = vsel %vm2611_vm10, %v2613_v58, 0.0  ;;  %v2620_v62 = vsel %vm2617_vm11, %v2618_v59, 0.0 }
 0x6ba   :  { %v2616_v45 = vadd.f32 %v2615_v61, %v2609_v60 }
 0x6bc   :  { %v2621_v63 = vadd.f32 %v2620_v62, %v2616_v45 }
 0x6be   :  { %2622 = vst [vmem:[#allocation2] sm:$0x3] %v2621_v63 }
 0x6bf   :  { %3636 = shalt.err (!%p3633_p4)
}
 0x6c0   :  { %s3637_s1 = scalar_lea.hbm %s4385_s7, 32 }
 0x6c1   :  { %p3638_p5 = scmp.ne.s32.totalorder %s4385_s7, %s3637_s1  ;;  %p3641_p6 = scmp.lt.u32.totalorder %s3637_s1, %s4385_s7 }
 0x6c3   :  { %p3643_p7 = pnand %p3641_p6, %p3638_p5 }
 0x6c5   :  { %3646 = shalt.err (!%p3643_p7)
}
 0x6c6   :  { %2632 = dma.vmem_to_hbm [thread:$0]  %s2630_s20, 32, %s4385_s7, [#allocation3]  }
 0x6c7   :  { %3647 = dma.done.wait [#allocation3], 32  }
 0x6c8   :  { %3648 = vsyncadd [#allocation3], 4294967264 }
 0x6c9   :  { %2636 = vsyncpa [#allocation3], 1 }

</bundles_post_ra>
